<compile_context>
chip_gen: v5e
topology: v5e:2x2
jax: 0.10.0
libtpu: 0.0.40
codegen_flags: <defaults>
</compile_context>

<pallas_src>
import functools

import jax
import jax.numpy as jnp
from jax.experimental import pallas as pl
from jax.experimental.pallas import tpu as pltpu

EPS = 1e-5
LANE = 128
VMEM_LIMIT = 32 * 1024 * 1024


def _round_up(v, m):
    return ((v + m - 1) // m) * m


def _vmem_spec():
    return pl.BlockSpec(memory_space=pltpu.MemorySpace.VMEM)


# --------------------------------------------------------------------------- #
# Kernels
# --------------------------------------------------------------------------- #
def _dense_kernel(x_ref, w_ref, o_ref):
    """o = x @ w   (bf16 operands, f32 accumulation, bf16 output)."""
    o_ref[...] = jnp.dot(x_ref[...], w_ref[...],
                         preferred_element_type=jnp.float32).astype(o_ref.dtype)


def _aggregate_kernel(a_ref, xw_ref, b_ref, h_ref, *, tile_n, n_real):
    """One row-tile of H = relu(A_hat @ XW + b); padded rows forced to zero."""
    i = pl.program_id(0)
    acc = jnp.dot(a_ref[...], xw_ref[...], preferred_element_type=jnp.float32)
    h = jnp.maximum(acc + b_ref[...], 0.0)
    # In-kernel row mask (VPU iota + compare; no extra input DMA).
    row = jax.lax.broadcasted_iota(jnp.int32, h.shape, 0) + i * tile_n
    h_ref[...] = jnp.where(row < n_real, h, 0.0)


def _ln_stats(h, inv_count):
    # Padded rows/channels of h are exactly zero, so plain sums over the padded
    # slab equal the real sums; divide by the REAL element count (inv_count).
    s1 = jnp.sum(h, keepdims=True)        # (1, 1)
    s2 = jnp.sum(h * h, keepdims=True)    # (1, 1)
    mean = s1 * inv_count
    var = jnp.maximum(s2 * inv_count - mean * mean, 0.0)
    std = jnp.sqrt(var)
    # PyG graph-mode LayerNorm: (x - mean) / (std + eps); approx recip -> EUP slot.
    inv_std = pl.reciprocal(std + EPS, approx=True)
    return mean, inv_std


def _ln_dense_kernel(h_ref, g_ref, be_ref, w_ref, o_ref, *, inv_count):
    """Graph LayerNorm of h, then the (hoisted) X @ W of the NEXT layer."""
    h = h_ref[...]
    mean, inv_std = _ln_stats(h, inv_count)
    y = (h - mean) * inv_std * g_ref[...] + be_ref[...]
    o_ref[...] = jnp.dot(y.astype(jnp.bfloat16), w_ref[...],
                         preferred_element_type=jnp.float32).astype(o_ref.dtype)


def _ln_out_kernel(h_ref, g_ref, be_ref, o_ref, *, inv_count):
    """Final graph LayerNorm (lane-dense f32 output)."""
    h = h_ref[...]
    mean, inv_std = _ln_stats(h, inv_count)
    o_ref[...] = (h - mean) * inv_std * g_ref[...] + be_ref[...]


# --------------------------------------------------------------------------- #
# pallas_call wrappers
# --------------------------------------------------------------------------- #
def _dense(x, w):
    n_pad = x.shape[0]
    return pl.pallas_call(
        _dense_kernel,
        out_shape=jax.ShapeDtypeStruct((n_pad, w.shape[1]), jnp.bfloat16),
        in_specs=[_vmem_spec(), _vmem_spec()],
        out_specs=_vmem_spec(),
        compiler_params=pltpu.CompilerParams(vmem_limit_bytes=VMEM_LIMIT),
    )(x, w)


def _aggregate(a, xw, b, n_real, tile_n):
    n_pad = a.shape[0]
    c_pad = xw.shape[1]
    kern = functools.partial(_aggregate_kernel, tile_n=tile_n, n_real=n_real)
    return pl.pallas_call(
        kern,
        out_shape=jax.ShapeDtypeStruct((n_pad, c_pad), jnp.float32),
        grid_spec=pltpu.PrefetchScalarGridSpec(
            num_scalar_prefetch=0,
            grid=(n_pad // tile_n,),
            in_specs=[
                pl.BlockSpec((tile_n, n_pad), lambda i: (i, 0)),   # streamed A row-tile
                pl.BlockSpec((n_pad, c_pad), lambda i: (0, 0)),    # resident XW
                pl.BlockSpec((1, c_pad), lambda i: (0, 0)),        # resident bias
            ],
            out_specs=pl.BlockSpec((tile_n, c_pad), lambda i: (i, 0)),
        ),
        compiler_params=pltpu.CompilerParams(
            dimension_semantics=("parallel",),
            vmem_limit_bytes=VMEM_LIMIT,
        ),
    )(a, xw, b)


def _ln_dense(h, g, be, w_next, count):
    n_pad = h.shape[0]
    kern = functools.partial(_ln_dense_kernel, inv_count=1.0 / count)
    return pl.pallas_call(
        kern,
        out_shape=jax.ShapeDtypeStruct((n_pad, w_next.shape[1]), jnp.bfloat16),
        in_specs=[_vmem_spec()] * 4,
        out_specs=_vmem_spec(),
        compiler_params=pltpu.CompilerParams(vmem_limit_bytes=VMEM_LIMIT),
    )(h, g, be, w_next)


def _ln_out(h, g, be, count):
    n_pad, c_pad = h.shape
    kern = functools.partial(_ln_out_kernel, inv_count=1.0 / count)
    return pl.pallas_call(
        kern,
        out_shape=jax.ShapeDtypeStruct((n_pad, c_pad), jnp.float32),
        in_specs=[_vmem_spec()] * 3,
        out_specs=_vmem_spec(),
        compiler_params=pltpu.CompilerParams(vmem_limit_bytes=VMEM_LIMIT),
    )(h, g, be)


# --------------------------------------------------------------------------- #
# Forward pass
# --------------------------------------------------------------------------- #
def gnn_forward_pallas(a_hat, x, params, tile_n=128):
    n, f_in = x.shape
    hid = params["w1"].shape[1]
    out_dim = params["w3"].shape[1]

    n_pad = _round_up(n, tile_n)
    f_pad = _round_up(f_in, LANE)
    h_pad = _round_up(hid, LANE)
    o_pad = _round_up(out_dim, LANE)

    def pad2(v, r, c, dtype):
        return jnp.zeros((r, c), dtype).at[:v.shape[0], :v.shape[1]].set(v.astype(dtype))

    # bf16 MXU operands; bias / LN affine params stay f32.
    a_p = pad2(a_hat, n_pad, n_pad, jnp.bfloat16)
    x_p = pad2(x, n_pad, f_pad, jnp.bfloat16)

    w1 = pad2(params["w1"], f_pad, h_pad, jnp.bfloat16)
    w2 = pad2(params["w2"], h_pad, h_pad, jnp.bfloat16)
    w3 = pad2(params["w3"], h_pad, o_pad, jnp.bfloat16)
    b1 = pad2(params["b1"], 1, h_pad, jnp.float32)
    b2 = pad2(params["b2"], 1, h_pad, jnp.float32)
    b3 = pad2(params["b3"], 1, o_pad, jnp.float32)
    g1 = pad2(params["g1"], 1, h_pad, jnp.float32)
    g2 = pad2(params["g2"], 1, h_pad, jnp.float32)
    g3 = pad2(params["g3"], 1, o_pad, jnp.float32)
    be1 = pad2(params["be1"], 1, h_pad, jnp.float32)
    be2 = pad2(params["be2"], 1, h_pad, jnp.float32)
    be3 = pad2(params["be3"], 1, o_pad, jnp.float32)

    # layer 1: XW hoisted out of the A-tile loop, then tiled aggregation.
    xw = _dense(x_p, w1)
    h = _aggregate(a_p, xw, b1, n, tile_n)
    # layer 2: LN1 fused with X @ W2, then tiled aggregation.
    xw = _ln_dense(h, g1, be1, w2, n * hid)
    h = _aggregate(a_p, xw, b2, n, tile_n)
    # layer 3: LN2 fused with X @ W3, then tiled aggregation.
    xw = _ln_dense(h, g2, be2, w3, n * hid)
    h = _aggregate(a_p, xw, b3, n, tile_n)
    # final LN3 (lane-dense padded output; real columns sliced below).
    y = _ln_out(h, g3, be3, n * out_dim)

    return y[:n, :out_dim].reshape(-1)          # x.flatten()


# --------------------------------------------------------------------------- #
# Plain-JAX glue, params, reference
# --------------------------------------------------------------------------- #
def build_normalized_adjacency(edge_index, num_nodes):
    """Dense A_hat = D^{-1/2}(A + I)D^{-1/2}, matching GCNConv's gcn_norm."""
    src, dst = edge_index[0], edge_index[1]
    A = jnp.zeros((num_nodes, num_nodes), jnp.float32)
    A = A.at[dst, src].add(1.0)
    A = A + jnp.eye(num_nodes, dtype=jnp.float32)
    deg = A.sum(axis=1)
    dinv = jnp.where(deg > 0, 1.0 / jnp.sqrt(deg), 0.0)
    return A * dinv[:, None] * dinv[None, :]


def init_params(key, input_dim=8, hidden_dim=64, output_dim=1):
    ks = jax.random.split(key, 3)

    def glorot(k, fan_in, fan_out):
        lim = jnp.sqrt(6.0 / (fan_in + fan_out))
        return jax.random.uniform(k, (fan_in, fan_out), jnp.float32, -lim, lim)

    return {
        "w1": glorot(ks[0], input_dim, hidden_dim),
        "b1": jnp.zeros((1, hidden_dim), jnp.float32),
        "g1": jnp.ones((1, hidden_dim), jnp.float32),
        "be1": jnp.zeros((1, hidden_dim), jnp.float32),
        "w2": glorot(ks[1], hidden_dim, hidden_dim),
        "b2": jnp.zeros((1, hidden_dim), jnp.float32),
        "g2": jnp.ones((1, hidden_dim), jnp.float32),
        "be2": jnp.zeros((1, hidden_dim), jnp.float32),
        "w3": glorot(ks[2], hidden_dim, output_dim),
        "b3": jnp.zeros((1, output_dim), jnp.float32),
        "g3": jnp.ones((1, output_dim), jnp.float32),
        "be3": jnp.zeros((1, output_dim), jnp.float32),
    }


def gnn_forward_ref(a_hat, x, p):
    """Pure-f32 JAX reference mirroring the PyTorch forward."""
    def layer(h, w, b, g, be):
        h = a_hat @ (h @ w) + b
        h = jnp.maximum(h, 0.0)
        hc = h - jnp.mean(h)
        std = jnp.sqrt(jnp.mean(hc * hc))
        return hc / (std + EPS) * g + be

    h = layer(x, p["w1"], p["b1"], p["g1"], p["be1"])
    h = layer(h, p["w2"], p["b2"], p["g2"], p["be2"])
    h = layer(h, p["w3"], p["b3"], p["g3"], p["be3"])
    return h.reshape(-1)


if __name__ == "__main__":
    INPUT_DIM, HIDDEN_DIM, OUTPUT_DIM = 8, 64, 1
    N = 256   # number of graph nodes (2 row-tiles of 128 -> exercises the grid)

    key = jax.random.PRNGKey(0)
    k_feat, k_par = jax.random.split(key)

    x = jax.random.normal(k_feat, (N, INPUT_DIM), jnp.float32)

    # deterministic graph: undirected ring (both directions)
    idx = jnp.arange(N)
    src = jnp.concatenate([idx, (idx + 1) % N])
    dst = jnp.concatenate([(idx + 1) % N, idx])
    edge_index = jnp.stack([src, dst], axis=0)   # [2, 2N]

    a_hat = build_normalized_adjacency(edge_index, N)
    params = init_params(k_par, INPUT_DIM, HIDDEN_DIM, OUTPUT_DIM)

    out = jax.jit(gnn_forward_pallas)(a_hat, x, params)
    out = jax.block_until_ready(out)

    ref = gnn_forward_ref(a_hat, x, params)
    assert out.shape == (N * OUTPUT_DIM,)
    # bf16 MXU operands + approx reciprocal across 3 stacked layers => compare
    # against the pure-f32 reference at bf16-level tolerance.
    max_err = float(jnp.max(jnp.abs(out - ref)))
    assert max_err < 1e-1, max_err

    print("KERNEL_OK")
</pallas_src>

<mosaic_0001>
module attributes {stable_mosaic.version = 11 : i64} {
  func.func @_ln_dense_kernel(%arg0: memref<256x128xf32, #tpu.memory_space<vmem>>, %arg1: memref<1x128xf32, #tpu.memory_space<vmem>>, %arg2: memref<1x128xf32, #tpu.memory_space<vmem>>, %arg3: memref<128x128xbf16, #tpu.memory_space<vmem>>, %arg4: memref<256x128xbf16, #tpu.memory_space<vmem>>) attributes {dimension_semantics = [], scalar_prefetch = 0 : i64, scratch_operands = 0 : i64, tpu.core_type = #tpu.core_type<tc>} {
    %c0 = arith.constant 0 : index
    %c0_0 = arith.constant 0 : index
    %0 = vector.load %arg0[%c0, %c0_0] : memref<256x128xf32, #tpu.memory_space<vmem>>, vector<256x128xf32>
    %1 = vector.shape_cast %0 : vector<256x128xf32> to vector<1x256x128xf32>
    %cst = arith.constant dense<0.000000e+00> : vector<1xf32>
    %2 = vector.multi_reduction <add>, %1, %cst [1, 2] : vector<1x256x128xf32> to vector<1xf32>
    %3 = vector.shape_cast %2 : vector<1xf32> to vector<1x1x1xf32>
    %4 = vector.extract %3[0, 0, 0] : f32 from vector<1x1x1xf32>
    %5 = vector.broadcast %4 : f32 to vector<1x1xf32>
    %6 = arith.mulf %0, %0 : vector<256x128xf32>
    %7 = vector.shape_cast %6 : vector<256x128xf32> to vector<1x256x128xf32>
    %cst_1 = arith.constant dense<0.000000e+00> : vector<1xf32>
    %8 = vector.multi_reduction <add>, %7, %cst_1 [1, 2] : vector<1x256x128xf32> to vector<1xf32>
    %9 = vector.shape_cast %8 : vector<1xf32> to vector<1x1x1xf32>
    %10 = vector.extract %9[0, 0, 0] : f32 from vector<1x1x1xf32>
    %11 = vector.broadcast %10 : f32 to vector<1x1xf32>
    %cst_2 = arith.constant 6.10351563E-5 : f32
    %12 = vector.broadcast %cst_2 : f32 to vector<1x1xf32>
    %13 = arith.mulf %5, %12 : vector<1x1xf32>
    %cst_3 = arith.constant 6.10351563E-5 : f32
    %14 = vector.broadcast %cst_3 : f32 to vector<1x1xf32>
    %15 = arith.mulf %11, %14 : vector<1x1xf32>
    %16 = arith.mulf %13, %13 : vector<1x1xf32>
    %17 = arith.subf %15, %16 : vector<1x1xf32>
    %cst_4 = arith.constant 0.000000e+00 : f32
    %18 = vector.broadcast %cst_4 : f32 to vector<1x1xf32>
    %19 = arith.maximumf %17, %18 : vector<1x1xf32>
    %20 = math.sqrt %19 : vector<1x1xf32>
    %cst_5 = arith.constant 9.99999974E-6 : f32
    %21 = vector.broadcast %cst_5 : f32 to vector<1x1xf32>
    %22 = arith.addf %20, %21 : vector<1x1xf32>
    %23 = tpu.reciprocal %22 {approx = true} : vector<1x1xf32> -> vector<1x1xf32>
    %24 = vector.broadcast %13 : vector<1x1xf32> to vector<256x128xf32>
    %25 = arith.subf %0, %24 : vector<256x128xf32>
    %26 = vector.broadcast %23 : vector<1x1xf32> to vector<256x128xf32>
    %27 = arith.mulf %25, %26 : vector<256x128xf32>
    %c0_6 = arith.constant 0 : index
    %c0_7 = arith.constant 0 : index
    %28 = vector.load %arg1[%c0_6, %c0_7] : memref<1x128xf32, #tpu.memory_space<vmem>>, vector<1x128xf32>
    %29 = vector.broadcast %28 : vector<1x128xf32> to vector<256x128xf32>
    %30 = arith.mulf %27, %29 : vector<256x128xf32>
    %c0_8 = arith.constant 0 : index
    %c0_9 = arith.constant 0 : index
    %31 = vector.load %arg2[%c0_8, %c0_9] : memref<1x128xf32, #tpu.memory_space<vmem>>, vector<1x128xf32>
    %32 = vector.broadcast %31 : vector<1x128xf32> to vector<256x128xf32>
    %33 = arith.addf %30, %32 : vector<256x128xf32>
    %34 = arith.truncf %33 : vector<256x128xf32> to vector<256x128xbf16>
    %c0_10 = arith.constant 0 : index
    %c0_11 = arith.constant 0 : index
    %35 = vector.load %arg3[%c0_10, %c0_11] : memref<128x128xbf16, #tpu.memory_space<vmem>>, vector<128x128xbf16>
    %cst_12 = arith.constant dense<0.000000e+00> : vector<256x128xf32>
    %36 = tpu.matmul %34, %35, %cst_12 {dimension_numbers = #tpu.dot_dimension_numbers<[1], [0], [0], [1], [0, 0, 1, 1], [], []>} : vector<256x128xbf16>, vector<128x128xbf16>, vector<256x128xf32> -> vector<256x128xf32>
    %37 = arith.truncf %36 : vector<256x128xf32> to vector<256x128xbf16>
    %c0_13 = arith.constant 0 : index
    %c0_14 = arith.constant 0 : index
    %38 = vector.load %arg4[%c0_13, %c0_14] : memref<256x128xbf16, #tpu.memory_space<vmem>>, vector<256x128xbf16>
    tpu.vector_store %arg4[%c0_13, %c0_14], %37 {strides = array<i32>} : memref<256x128xbf16, #tpu.memory_space<vmem>>, vector<256x128xbf16>,
    return
  }
}

module attributes {stable_mosaic.version = 11 : i64} {
  func.func @_dense_kernel(%arg0: memref<256x128xbf16, #tpu.memory_space<vmem>>, %arg1: memref<128x128xbf16, #tpu.memory_space<vmem>>, %arg2: memref<256x128xbf16, #tpu.memory_space<vmem>>) attributes {dimension_semantics = [], scalar_prefetch = 0 : i64, scratch_operands = 0 : i64, tpu.core_type = #tpu.core_type<tc>} {
    %c0 = arith.constant 0 : index
    %c0_0 = arith.constant 0 : index
    %0 = vector.load %arg0[%c0, %c0_0] : memref<256x128xbf16, #tpu.memory_space<vmem>>, vector<256x128xbf16>
    %c0_1 = arith.constant 0 : index
    %c0_2 = arith.constant 0 : index
    %1 = vector.load %arg1[%c0_1, %c0_2] : memref<128x128xbf16, #tpu.memory_space<vmem>>, vector<128x128xbf16>
    %cst = arith.constant dense<0.000000e+00> : vector<256x128xf32>
    %2 = tpu.matmul %0, %1, %cst {dimension_numbers = #tpu.dot_dimension_numbers<[1], [0], [0], [1], [0, 0, 1, 1], [], []>} : vector<256x128xbf16>, vector<128x128xbf16>, vector<256x128xf32> -> vector<256x128xf32>
    %3 = arith.truncf %2 : vector<256x128xf32> to vector<256x128xbf16>
    %c0_3 = arith.constant 0 : index
    %c0_4 = arith.constant 0 : index
    %4 = vector.load %arg2[%c0_3, %c0_4] : memref<256x128xbf16, #tpu.memory_space<vmem>>, vector<256x128xbf16>
    tpu.vector_store %arg2[%c0_3, %c0_4], %3 {strides = array<i32>} : memref<256x128xbf16, #tpu.memory_space<vmem>>, vector<256x128xbf16>,
    return
  }
}

module attributes {stable_mosaic.version = 11 : i64} {
  func.func @_aggregate_kernel(%arg0: i32, %arg1: memref<128x256xbf16, #tpu.memory_space<vmem>>, %arg2: memref<256x128xbf16, #tpu.memory_space<vmem>>, %arg3: memref<1x128xf32, #tpu.memory_space<vmem>>, %arg4: memref<128x128xf32, #tpu.memory_space<vmem>>) attributes {dimension_semantics = [#tpu.dimension_semantics<parallel>], iteration_bounds = array<i64: 2>, scalar_prefetch = 0 : i64, scratch_operands = 0 : i64, tpu.core_type = #tpu.core_type<tc>, window_params = [{transform_indices = @transform_0, window_bounds = array<i64: 128, 256>}, {pipeline_mode = #tpu.pipeline_mode<synchronous>, transform_indices = @transform_1, window_bounds = array<i64: 256, 128>}, {pipeline_mode = #tpu.pipeline_mode<synchronous>, transform_indices = @transform_2, window_bounds = array<i64: 1, 128>}, {transform_indices = @transform_3, window_bounds = array<i64: 128, 128>}]} {
    %c0 = arith.constant 0 : index
    %c0_0 = arith.constant 0 : index
    %0 = vector.load %arg1[%c0, %c0_0] : memref<128x256xbf16, #tpu.memory_space<vmem>>, vector<128x256xbf16>
    %c0_1 = arith.constant 0 : index
    %c0_2 = arith.constant 0 : index
    %1 = vector.load %arg2[%c0_1, %c0_2] : memref<256x128xbf16, #tpu.memory_space<vmem>>, vector<256x128xbf16>
    %cst = arith.constant dense<0.000000e+00> : vector<128x128xf32>
    %2 = tpu.matmul %0, %1, %cst {dimension_numbers = #tpu.dot_dimension_numbers<[1], [0], [0], [1], [0, 0, 1, 1], [], []>} : vector<128x256xbf16>, vector<256x128xbf16>, vector<128x128xf32> -> vector<128x128xf32>
    %c0_3 = arith.constant 0 : index
    %c0_4 = arith.constant 0 : index
    %3 = vector.load %arg3[%c0_3, %c0_4] : memref<1x128xf32, #tpu.memory_space<vmem>>, vector<1x128xf32>
    %4 = vector.broadcast %3 : vector<1x128xf32> to vector<128x128xf32>
    %5 = arith.addf %2, %4 : vector<128x128xf32>
    %cst_5 = arith.constant 0.000000e+00 : f32
    %6 = vector.broadcast %cst_5 : f32 to vector<128x128xf32>
    %7 = arith.maximumf %5, %6 : vector<128x128xf32>
    %8 = tpu.iota {dimensions = array<i32: 0>} : vector<128x128xi32>
    %c128_i32 = arith.constant 128 : i32
    %9 = arith.muli %arg0, %c128_i32 : i32
    %10 = vector.broadcast %9 : i32 to vector<128x128xi32>
    %11 = arith.addi %8, %10 : vector<128x128xi32>
    %c256_i32 = arith.constant 256 : i32
    %12 = vector.broadcast %c256_i32 : i32 to vector<128x128xi32>
    %13 = arith.cmpi slt, %11, %12 : vector<128x128xi32>
    %cst_6 = arith.constant 0.000000e+00 : f32
    %14 = vector.broadcast %cst_6 : f32 to vector<128x128xf32>
    %15 = arith.select %13, %7, %14 : vector<128x128xi1>, vector<128x128xf32>
    %c0_7 = arith.constant 0 : index
    %c0_8 = arith.constant 0 : index
    %16 = vector.load %arg4[%c0_7, %c0_8] : memref<128x128xf32, #tpu.memory_space<vmem>>, vector<128x128xf32>
    tpu.vector_store %arg4[%c0_7, %c0_8], %15 {strides = array<i32>} : memref<128x128xf32, #tpu.memory_space<vmem>>, vector<128x128xf32>,
    return
  }
  func.func @transform_0(%arg0: i32) -> (i32, i32) {
    %c0_i32 = arith.constant 0 : i32
    %c0_i32_0 = arith.constant 0 : i32
    return %arg0, %c0_i32 : i32, i32
  }
  func.func @transform_1(%arg0: i32) -> (i32, i32) {
    %c0_i32 = arith.constant 0 : i32
    %c0_i32_0 = arith.constant 0 : i32
    %c0_i32_1 = arith.constant 0 : i32
    return %c0_i32, %c0_i32_0 : i32, i32
  }
  func.func @transform_2(%arg0: i32) -> (i32, i32) {
    %c0_i32 = arith.constant 0 : i32
    %c0_i32_0 = arith.constant 0 : i32
    %c0_i32_1 = arith.constant 0 : i32
    return %c0_i32, %c0_i32_0 : i32, i32
  }
  func.func @transform_3(%arg0: i32) -> (i32, i32) {
    %c0_i32 = arith.constant 0 : i32
    %c0_i32_0 = arith.constant 0 : i32
    return %arg0, %c0_i32 : i32, i32
  }
}

module attributes {stable_mosaic.version = 11 : i64} {
  func.func @_ln_out_kernel(%arg0: memref<256x128xf32, #tpu.memory_space<vmem>>, %arg1: memref<1x128xf32, #tpu.memory_space<vmem>>, %arg2: memref<1x128xf32, #tpu.memory_space<vmem>>, %arg3: memref<256x128xf32, #tpu.memory_space<vmem>>) attributes {dimension_semantics = [], scalar_prefetch = 0 : i64, scratch_operands = 0 : i64, tpu.core_type = #tpu.core_type<tc>} {
    %c0 = arith.constant 0 : index
    %c0_0 = arith.constant 0 : index
    %0 = vector.load %arg0[%c0, %c0_0] : memref<256x128xf32, #tpu.memory_space<vmem>>, vector<256x128xf32>
    %1 = vector.shape_cast %0 : vector<256x128xf32> to vector<1x256x128xf32>
    %cst = arith.constant dense<0.000000e+00> : vector<1xf32>
    %2 = vector.multi_reduction <add>, %1, %cst [1, 2] : vector<1x256x128xf32> to vector<1xf32>
    %3 = vector.shape_cast %2 : vector<1xf32> to vector<1x1x1xf32>
    %4 = vector.extract %3[0, 0, 0] : f32 from vector<1x1x1xf32>
    %5 = vector.broadcast %4 : f32 to vector<1x1xf32>
    %6 = arith.mulf %0, %0 : vector<256x128xf32>
    %7 = vector.shape_cast %6 : vector<256x128xf32> to vector<1x256x128xf32>
    %cst_1 = arith.constant dense<0.000000e+00> : vector<1xf32>
    %8 = vector.multi_reduction <add>, %7, %cst_1 [1, 2] : vector<1x256x128xf32> to vector<1xf32>
    %9 = vector.shape_cast %8 : vector<1xf32> to vector<1x1x1xf32>
    %10 = vector.extract %9[0, 0, 0] : f32 from vector<1x1x1xf32>
    %11 = vector.broadcast %10 : f32 to vector<1x1xf32>
    %cst_2 = arith.constant 3.906250e-03 : f32
    %12 = vector.broadcast %cst_2 : f32 to vector<1x1xf32>
    %13 = arith.mulf %5, %12 : vector<1x1xf32>
    %cst_3 = arith.constant 3.906250e-03 : f32
    %14 = vector.broadcast %cst_3 : f32 to vector<1x1xf32>
    %15 = arith.mulf %11, %14 : vector<1x1xf32>
    %16 = arith.mulf %13, %13 : vector<1x1xf32>
    %17 = arith.subf %15, %16 : vector<1x1xf32>
    %cst_4 = arith.constant 0.000000e+00 : f32
    %18 = vector.broadcast %cst_4 : f32 to vector<1x1xf32>
    %19 = arith.maximumf %17, %18 : vector<1x1xf32>
    %20 = math.sqrt %19 : vector<1x1xf32>
    %cst_5 = arith.constant 9.99999974E-6 : f32
    %21 = vector.broadcast %cst_5 : f32 to vector<1x1xf32>
    %22 = arith.addf %20, %21 : vector<1x1xf32>
    %23 = tpu.reciprocal %22 {approx = true} : vector<1x1xf32> -> vector<1x1xf32>
    %24 = vector.broadcast %13 : vector<1x1xf32> to vector<256x128xf32>
    %25 = arith.subf %0, %24 : vector<256x128xf32>
    %26 = vector.broadcast %23 : vector<1x1xf32> to vector<256x128xf32>
    %27 = arith.mulf %25, %26 : vector<256x128xf32>
    %c0_6 = arith.constant 0 : index
    %c0_7 = arith.constant 0 : index
    %28 = vector.load %arg1[%c0_6, %c0_7] : memref<1x128xf32, #tpu.memory_space<vmem>>, vector<1x128xf32>
    %29 = vector.broadcast %28 : vector<1x128xf32> to vector<256x128xf32>
    %30 = arith.mulf %27, %29 : vector<256x128xf32>
    %c0_8 = arith.constant 0 : index
    %c0_9 = arith.constant 0 : index
    %31 = vector.load %arg2[%c0_8, %c0_9] : memref<1x128xf32, #tpu.memory_space<vmem>>, vector<1x128xf32>
    %32 = vector.broadcast %31 : vector<1x128xf32> to vector<256x128xf32>
    %33 = arith.addf %30, %32 : vector<256x128xf32>
    %c0_10 = arith.constant 0 : index
    %c0_11 = arith.constant 0 : index
    %34 = vector.load %arg3[%c0_10, %c0_11] : memref<256x128xf32, #tpu.memory_space<vmem>>, vector<256x128xf32>
    tpu.vector_store %arg3[%c0_10, %c0_11], %33 {strides = array<i32>} : memref<256x128xf32, #tpu.memory_space<vmem>>, vector<256x128xf32>,
    return
  }
}

</mosaic_0001>

<bundles_post_ra>
// kernel: gnn_forward_pallas.9
= control target key start
LH: loop header
LB: loop body
LE: loop exit
PB: predicated region body
PF: predicated region fallthrough
CT: control target
= control target key end

     0   :  { %s1253_s0 = inlined_call_operand.vmem [shape: f32[256,128], index: 0, kind: input, shape index: {}]   ;;  %s1254_s1 = inlined_call_operand.vmem [shape: f32[1,128], index: 1, kind: input, shape index: {}]   ;;  %s1255_s2 = inlined_call_operand.vmem [shape: f32[1,128], index: 2, kind: input, shape index: {}]   ;;  %s1256_s3 = inlined_call_operand.vmem [shape: bf16[128,128], index: 3, kind: input, shape index: {}]   ;;  %s1257_s4 = inlined_call_operand.vmem [shape: bf16[256,128], index: 4, kind: output, shape index: {}]  }
   0x1   :  { %v752_v0 = vld [vmem:[%s1253_s0] sm:$0xff]  ;;  %v757_v1 = vld [vmem:[%s1253_s0 + $0x8] sm:$0xff]  ;;  %v762_v2 = vld [vmem:[%s1253_s0 + $0x10] sm:$0xff] }
   0x2   :  { %v49_v3 = vadd.f32 %v757_v1, %v752_v0  ;;  %v90_v4 = vmul.f32 %v752_v0, %v752_v0  ;;  %v91_v5 = vmul.f32 %v757_v1, %v757_v1  ;;  %v773_v6 = vld [vmem:[%s1253_s0 + $0x18] sm:$0xff]  ;;  %v92_v7 = vmul.f32 %v762_v2, %v762_v2  ;;  %v781_v9 = vld [vmem:[%s1253_s0 + $0x20] sm:$0xff]  ;;  %v789_v13 = vld [vmem:[%s1253_s0 + $0x28] sm:$0xff] }
   0x3   :  { %v93_v10 = vmul.f32 %v773_v6, %v773_v6  ;;  %v94_v14 = vmul.f32 %v781_v9, %v781_v9  ;;  %v797_v17 = vld [vmem:[%s1253_s0 + $0x30] sm:$0xff]  ;;  %v95_v18 = vmul.f32 %v789_v13, %v789_v13  ;;  %v805_v21 = vld [vmem:[%s1253_s0 + $0x38] sm:$0xff]  ;;  %v813_v25 = vld [vmem:[%s1253_s0 + $0x40] sm:$0xff] }
   0x4   :  { %v50_v8 = vadd.f32 %v49_v3, %v762_v2  ;;  %v122_v11 = vadd.f32 %v91_v5, %v90_v4  ;;  %v96_v22 = vmul.f32 %v797_v17, %v797_v17  ;;  %v97_v26 = vmul.f32 %v805_v21, %v805_v21  ;;  %v821_v29 = vld [vmem:[%s1253_s0 + $0x48] sm:$0xff]  ;;  %v829_v33 = vld [vmem:[%s1253_s0 + $0x50] sm:$0xff]  ;;  %v837_v37 = vld [vmem:[%s1253_s0 + $0x58] sm:$0xff] }
   0x5   :  { %v98_v30 = vmul.f32 %v813_v25, %v813_v25  ;;  %v99_v34 = vmul.f32 %v821_v29, %v821_v29  ;;  %v100_v38 = vmul.f32 %v829_v33, %v829_v33  ;;  %v845_v41 = vld [vmem:[%s1253_s0 + $0x60] sm:$0xff]  ;;  %v101_v42 = vmul.f32 %v837_v37, %v837_v37  ;;  %v853_v45 = vld [vmem:[%s1253_s0 + $0x68] sm:$0xff]  ;;  %v861_v49 = vld [vmem:[%s1253_s0 + $0x70] sm:$0xff] }
   0x6   :  { %v51_v12 = vadd.f32 %v50_v8, %v773_v6  ;;  %v123_v15 = vadd.f32 %v122_v11, %v92_v7  ;;  %v102_v46 = vmul.f32 %v845_v41, %v845_v41  ;;  %v103_v50 = vmul.f32 %v853_v45, %v853_v45  ;;  %v869_v53 = vld [vmem:[%s1253_s0 + $0x78] sm:$0xff]  ;;  %v877_v57 = vld [vmem:[%s1253_s0 + $0x80] sm:$0xff]  ;;  %v885_v61 = vld [vmem:[%s1253_s0 + $0x88] sm:$0xff] }
   0x7   :  { %v104_v54 = vmul.f32 %v861_v49, %v861_v49  ;;  %v105_v58 = vmul.f32 %v869_v53, %v869_v53  ;;  %v106_v62 = vmul.f32 %v877_v57, %v877_v57  ;;  %v893_v4 = vld [vmem:[%s1253_s0 + $0x90] sm:$0xff]  ;;  %v107_v5 = vmul.f32 %v885_v61, %v885_v61 }
   0x8   :  { %v52_v16 = vadd.f32 %v51_v12, %v781_v9  ;;  %v124_v19 = vadd.f32 %v123_v15, %v93_v10  ;;  %v901_v10 = vld [vmem:[%s1253_s0 + $0x98] sm:$0xff]  ;;  %v108_v11 = vmul.f32 %v893_v4, %v893_v4  ;;  %v909_v15 = vld [vmem:[%s1253_s0 + $0xa0] sm:$0xff] }
   0xa   :  { %v53_v20 = vadd.f32 %v52_v16, %v789_v13  ;;  %v125_v23 = vadd.f32 %v124_v19, %v94_v14  ;;  %v109_v16 = vmul.f32 %v901_v10, %v901_v10 }
   0xc   :  { %v54_v24 = vadd.f32 %v53_v20, %v797_v17  ;;  %v126_v27 = vadd.f32 %v125_v23, %v95_v18  ;;  %v917_v20 = vld [vmem:[%s1253_s0 + $0xa8] sm:$0xff] }
   0xe   :  { %v55_v28 = vadd.f32 %v54_v24, %v805_v21  ;;  %v127_v31 = vadd.f32 %v126_v27, %v96_v22  ;;  %v110_v22 = vmul.f32 %v909_v15, %v909_v15  ;;  %v111_v27 = vmul.f32 %v917_v20, %v917_v20 }
  0x10   :  { %v56_v32 = vadd.f32 %v55_v28, %v813_v25  ;;  %v128_v35 = vadd.f32 %v127_v31, %v97_v26  ;;  %v925_v26 = vld [vmem:[%s1253_s0 + $0xb0] sm:$0xff]  ;;  %v933_v31 = vld [vmem:[%s1253_s0 + $0xb8] sm:$0xff] }
  0x12   :  { %v57_v36 = vadd.f32 %v56_v32, %v821_v29  ;;  %v129_v39 = vadd.f32 %v128_v35, %v98_v30  ;;  %v112_v32 = vmul.f32 %v925_v26, %v925_v26 }
  0x14   :  { %v58_v40 = vadd.f32 %v57_v36, %v829_v33  ;;  %v130_v43 = vadd.f32 %v129_v39, %v99_v34  ;;  %v941_v36 = vld [vmem:[%s1253_s0 + $0xc0] sm:$0xff] }
  0x16   :  { %v59_v44 = vadd.f32 %v58_v40, %v837_v37  ;;  %v131_v47 = vadd.f32 %v130_v43, %v100_v38  ;;  %v113_v38 = vmul.f32 %v933_v31, %v933_v31  ;;  %v114_v43 = vmul.f32 %v941_v36, %v941_v36 }
  0x18   :  { %v60_v48 = vadd.f32 %v59_v44, %v845_v41  ;;  %v132_v51 = vadd.f32 %v131_v47, %v101_v42  ;;  %v949_v42 = vld [vmem:[%s1253_s0 + $0xc8] sm:$0xff]  ;;  %v957_v47 = vld [vmem:[%s1253_s0 + $0xd0] sm:$0xff] }
  0x1a   :  { %v61_v52 = vadd.f32 %v60_v48, %v853_v45  ;;  %v133_v55 = vadd.f32 %v132_v51, %v102_v46  ;;  %v115_v48 = vmul.f32 %v949_v42, %v949_v42 }
  0x1c   :  { %v62_v56 = vadd.f32 %v61_v52, %v861_v49  ;;  %v134_v59 = vadd.f32 %v133_v55, %v103_v50  ;;  %v965_v52 = vld [vmem:[%s1253_s0 + $0xd8] sm:$0xff] }
  0x1e   :  { %v63_v60 = vadd.f32 %v62_v56, %v869_v53  ;;  %v135_v63 = vadd.f32 %v134_v59, %v104_v54  ;;  %v116_v54 = vmul.f32 %v957_v47, %v957_v47  ;;  %v117_v59 = vmul.f32 %v965_v52, %v965_v52 }
  0x20   :  { %v64_v3 = vadd.f32 %v63_v60, %v877_v57  ;;  %v136_v7 = vadd.f32 %v135_v63, %v105_v58  ;;  %v973_v58 = vld [vmem:[%s1253_s0 + $0xe0] sm:$0xff]  ;;  %v981_v63 = vld [vmem:[%s1253_s0 + $0xe8] sm:$0xff] }
  0x22   :  { %v65_v8 = vadd.f32 %v64_v3, %v885_v61  ;;  %v137_v12 = vadd.f32 %v136_v7, %v106_v62  ;;  %v118_v3 = vmul.f32 %v973_v58, %v973_v58 }
  0x24   :  { %v66_v14 = vadd.f32 %v65_v8, %v893_v4  ;;  %v138_v18 = vadd.f32 %v137_v12, %v107_v5  ;;  %v989_v8 = vld [vmem:[%s1253_s0 + $0xf0] sm:$0xff] }
  0x26   :  { %v67_v19 = vadd.f32 %v66_v14, %v901_v10  ;;  %v139_v23 = vadd.f32 %v138_v18, %v108_v11  ;;  %v119_v11 = vmul.f32 %v981_v63, %v981_v63 }
  0x28   :  { %v68_v24 = vadd.f32 %v67_v19, %v909_v15  ;;  %v140_v28 = vadd.f32 %v139_v23, %v109_v16  ;;  %v997_v16 = vld [vmem:[%s1253_s0 + $0xf8] sm:$0xff] }
  0x2a   :  { %v69_v30 = vadd.f32 %v68_v24, %v917_v20  ;;  %v141_v34 = vadd.f32 %v140_v28, %v110_v22  ;;  %v120_v22 = vmul.f32 %v989_v8, %v989_v8 }
  0x2c   :  { %v70_v35 = vadd.f32 %v69_v30, %v925_v26  ;;  %v142_v39 = vadd.f32 %v141_v34, %v111_v27  ;;  %v121_v27 = vmul.f32 %v997_v16, %v997_v16 }
  0x2e   :  { %v71_v40 = vadd.f32 %v70_v35, %v933_v31  ;;  %v143_v44 = vadd.f32 %v142_v39, %v112_v32 }
  0x30   :  { %v72_v46 = vadd.f32 %v71_v40, %v941_v36  ;;  %v144_v50 = vadd.f32 %v143_v44, %v113_v38 }
  0x32   :  { %v73_v51 = vadd.f32 %v72_v46, %v949_v42  ;;  %v145_v55 = vadd.f32 %v144_v50, %v114_v43 }
  0x34   :  { %v74_v56 = vadd.f32 %v73_v51, %v957_v47  ;;  %v146_v60 = vadd.f32 %v145_v55, %v115_v48 }
  0x36   :  { %v75_v62 = vadd.f32 %v74_v56, %v965_v52  ;;  %v147_v5 = vadd.f32 %v146_v60, %v116_v54  ;;  %v594_v56 = vld [vmem:[%s1256_s3 + $0x38] sm:$0xff]  ;;  %v592_v60 = vld [vmem:[%s1256_s3 + $0x28] sm:$0xff] }
  0x37   :  { %398 = vmatpush.bf16.msra.mxu0 %v594_v56  ;;  %690 = vmatpush.bf16.msra.mxu1 %v594_v56 }
  0x38   :  { %v76_v7 = vadd.f32 %v75_v62, %v973_v58  ;;  %v148_v12 = vadd.f32 %v147_v5, %v117_v59  ;;  %691 = vmatpush.bf16.msra.mxu2 %v594_v56  ;;  %692 = vmatpush.bf16.msra.mxu3 %v594_v56  ;;  %v593_v59 = vld [vmem:[%s1256_s3 + $0x30] sm:$0xff]  ;;  %v591_v62 = vld [vmem:[%s1256_s3 + $0x20] sm:$0xff]  ;;  %v590_v5 = vld [vmem:[%s1256_s3 + $0x18] sm:$0xff] }
  0x3a   :  { %v77_v14 = vadd.f32 %v76_v7, %v981_v63  ;;  %v149_v18 = vadd.f32 %v148_v12, %v118_v3  ;;  %v589_v12 = vld [vmem:[%s1256_s3 + $0x10] sm:$0xff] }
  0x3b   :  { %399 = vmatpush.bf16.msra.mxu0 %v593_v59  ;;  %693 = vmatpush.bf16.msra.mxu1 %v593_v59 }
  0x3c   :  { %v78_v19 = vadd.f32 %v77_v14, %v989_v8  ;;  %v150_v23 = vadd.f32 %v149_v18, %v119_v11  ;;  %694 = vmatpush.bf16.msra.mxu2 %v593_v59  ;;  %695 = vmatpush.bf16.msra.mxu3 %v593_v59 }
  0x3e   :  { %v79_v24 = vadd.f32 %v78_v19, %v997_v16  ;;  %v151_v28 = vadd.f32 %v150_v23, %v120_v22  ;;  %v588_v22 = vld [vmem:[%s1256_s3 + $0x8] sm:$0xff] }
  0x3f   :  { %400 = vmatpush.bf16.msra.mxu0 %v592_v60  ;;  %696 = vmatpush.bf16.msra.mxu1 %v592_v60 }
  0x40   :  { %80 = vadd.xlane.f32.xlu0 %v79_v24  ;;  %v152_v30 = vadd.f32 %v151_v28, %v121_v27  ;;  %697 = vmatpush.bf16.msra.mxu2 %v592_v60  ;;  %v587_v24 = vld [vmem:[%s1256_s3] sm:$0xff] }
  0x41   :  { %698 = vmatpush.bf16.msra.mxu3 %v592_v60 }
  0x43   :  { %401 = vmatpush.bf16.msra.mxu0 %v591_v62  ;;  %699 = vmatpush.bf16.msra.mxu1 %v591_v62 }
  0x44   :  { %700 = vmatpush.bf16.msra.mxu2 %v591_v62 }
  0x45   :  { %701 = vmatpush.bf16.msra.mxu3 %v591_v62 }
  0x47   :  { %402 = vmatpush.bf16.msra.mxu0 %v590_v5  ;;  %702 = vmatpush.bf16.msra.mxu1 %v590_v5 }
  0x48   :  { %153 = vadd.xlane.f32.xlu0 %v152_v30  ;;  %703 = vmatpush.bf16.msra.mxu2 %v590_v5 }
  0x49   :  { %704 = vmatpush.bf16.msra.mxu3 %v590_v5 }
  0x4b   :  { %403 = vmatpush.bf16.msra.mxu0 %v589_v12  ;;  %705 = vmatpush.bf16.msra.mxu1 %v589_v12 }
  0x4c   :  { %706 = vmatpush.bf16.msra.mxu2 %v589_v12 }
  0x4d   :  { %707 = vmatpush.bf16.msra.mxu3 %v589_v12 }
  0x4f   :  { %404 = vmatpush.bf16.msra.mxu0 %v588_v22  ;;  %708 = vmatpush.bf16.msra.mxu1 %v588_v22 }
  0x50   :  { %709 = vmatpush.bf16.msra.mxu2 %v588_v22 }
  0x51   :  { %710 = vmatpush.bf16.msra.mxu3 %v588_v22 }
  0x53   :  { %405 = vmatpush.bf16.msra.mxu0 %v587_v24  ;;  %711 = vmatpush.bf16.msra.mxu1 %v587_v24 }
  0x54   :  { %712 = vmatpush.bf16.msra.mxu2 %v587_v24 }
  0x55   :  { %713 = vmatpush.bf16.msra.mxu3 %v587_v24 }
  0xb3   :  { %v81_v32 = vpop.xlane.xlu0 %80 }
  0xb4   :  { %v82_v34 = vrot.slane %v81_v32, 4 }
  0xb6   :  { %v83_v35 = vadd.f32 %v82_v34, %v81_v32 }
  0xb8   :  { %v84_v38 = vrot.slane %v83_v35, 2 }
  0xba   :  { %v85_v39 = vadd.f32 %v84_v38, %v83_v35 }
  0xbb   :  { %v154_v40 = vpop.xlane.xlu0 %153 }
  0xbc   :  { %v155_v43 = vrot.slane %v154_v40, 4  ;;  %v86_v44 = vrot.slane %v85_v39, 1 }
  0xbe   :  { %v156_v46 = vadd.f32 %v155_v43, %v154_v40  ;;  %v87_v48 = vadd.f32 %v86_v44, %v85_v39 }
  0xc0   :  { %v157_v50 = vrot.slane %v156_v46, 2  ;;  %714 = vpush %v87_v48 }
  0xc2   :  { %v158_v51 = vadd.f32 %v157_v50, %v156_v46  ;;  %v1040_v50 = vld [vmem:[%s1254_s1] ss:$0 sm:$0xff] }
  0xc4   :  { %v159_v54 = vrot.slane %v158_v51, 1 }
  0xc6   :  { %v160_v55 = vadd.f32 %v159_v54, %v158_v51 }
  0xc8   :  { %716 = vpush %v160_v55 }
  0xf1   :  { %s715_s6 = spop %714 }
  0xf2   :  { %v89_v3 = vstv %s715_s6 }
  0xf3   :  { %v1020_v7 = vmul.f32 6.1035156e-05, %v89_v3 }
  0xf5   :  { %v165_v18 = vmul.f32 %v1020_v7, %v1020_v7  ;;  %v182_v46 = vsub.f32 %v752_v0, %v1020_v7  ;;  %v183_v48 = vsub.f32 %v757_v1, %v1020_v7  ;;  %v190_v51 = vsub.f32 %v813_v25, %v1020_v7  ;;  %v1059_v25 = vld [vmem:[%s1255_s2] ss:$0 sm:$0xff] }
  0xf6   :  { %v191_v55 = vsub.f32 %v821_v29, %v1020_v7  ;;  %v198_v56 = vsub.f32 %v877_v57, %v1020_v7  ;;  %v199_v0 = vsub.f32 %v885_v61, %v1020_v7  ;;  %v206_v1 = vsub.f32 %v941_v36, %v1020_v7 }
  0xf7   :  { %v207_v57 = vsub.f32 %v949_v42, %v1020_v7 }
  0xf9   :  { %s717_s11 = spop %716 }
  0xfa   :  { %v162_v11 = vstv %s717_s11 }
  0xfb   :  { %v164_v14 = vmul.f32 6.1035156e-05, %v162_v11 }
  0xfd   :  { %v166_v19 = vsub.f32 %v164_v14, %v165_v18 }
  0xff   :  { %v167_v23 = vmax.f32 %v166_v19, 0.0 }
 0x101   :  { %720 = vrsqrt.f32 %v167_v23  ;;  %vm175_vm0 = vcmp.eq.f32.partialorder %v167_v23, inf  ;;  %v178_v39 = vand.u32 2147483648, %v167_v23  ;;  %vm177_vm1 = vcmp.eq.f32.partialorder %v167_v23, 0.0 }
 0x107   :  { %v721_v27 = vpop.eup %720 }
 0x108   :  { %v169_v28 = vmul.f32 %v721_v27, %v167_v23 }
 0x10a   :  { %v170_v30 = vmul.f32 %v721_v27, %v169_v28 }
 0x10c   :  { %v171_v32 = vmul.f32 0.5, %v170_v30 }
 0x10e   :  { %v172_v34 = vsub.f32 1.5, %v171_v32 }
 0x110   :  { %v173_v35 = vmul.f32 %v721_v27, %v172_v34 }
 0x112   :  { %v174_v38 = vmul.f32 %v173_v35, %v167_v23 }
 0x114   :  { %v176_v40 = vsel %vm175_vm0, %v167_v23, %v174_v38 }
 0x115   :  { %v179_v43 = vsel %vm177_vm1, %v178_v39, %v176_v40 }
 0x116   :  { %v180_v44 = vadd.f32 1e-05, %v179_v43 }
 0x118   :  { %722 = vrcp.f32 %v180_v44 }
 0x11e   :  { %v1044_v54 = vpop.eup %722 }
 0x11f   :  { %v214_v59 = vmul.f32 %v1044_v54, %v182_v46  ;;  %v215_v60 = vmul.f32 %v1044_v54, %v183_v48  ;;  %v222_v29 = vmul.f32 %v1044_v54, %v190_v51  ;;  %v223_v62 = vmul.f32 %v1044_v54, %v191_v55 }
 0x120   :  { %v230_v61 = vmul.f32 %v1044_v54, %v198_v56  ;;  %v231_v36 = vmul.f32 %v1044_v54, %v199_v0  ;;  %v238_v3 = vmul.f32 %v1044_v54, %v206_v1  ;;  %v239_v14 = vmul.f32 %v1044_v54, %v207_v57 }
 0x121   :  { %v250_v5 = vmul.f32 %v1040_v50, %v214_v59  ;;  %v251_v11 = vmul.f32 %v1040_v50, %v215_v60  ;;  %v258_v12 = vmul.f32 %v1040_v50, %v222_v29  ;;  %v259_v18 = vmul.f32 %v1040_v50, %v223_v62 }
 0x122   :  { %v266_v42 = vmul.f32 %v1040_v50, %v230_v61  ;;  %v267_v19 = vmul.f32 %v1040_v50, %v231_v36  ;;  %v274_v22 = vmul.f32 %v1040_v50, %v238_v3  ;;  %v275_v28 = vmul.f32 %v1040_v50, %v239_v14 }
 0x123   :  { %v286_v23 = vadd.f32 %v1059_v25, %v250_v5  ;;  %v287_v24 = vadd.f32 %v1059_v25, %v251_v11  ;;  %v294_v27 = vadd.f32 %v1059_v25, %v258_v12  ;;  %v295_v30 = vadd.f32 %v1059_v25, %v259_v18 }
 0x124   :  { %v302_v32 = vadd.f32 %v1059_v25, %v266_v42  ;;  %v303_v34 = vadd.f32 %v1059_v25, %v267_v19  ;;  %v310_v35 = vadd.f32 %v1059_v25, %v274_v22  ;;  %v311_v39 = vadd.f32 %v1059_v25, %v275_v28 }
 0x125   :  { %v318_v38 = vpack.c.bf16 %v287_v24, %v286_v23  ;;  %v322_v40 = vpack.c.bf16 %v295_v30, %v294_v27  ;;  %v184_v46 = vsub.f32 %v762_v2, %v1020_v7  ;;  %v185_v48 = vsub.f32 %v773_v6, %v1020_v7 }
 0x126   :  { %v326_v43 = vpack.c.bf16 %v303_v34, %v302_v32  ;;  %v330_v44 = vpack.c.bf16 %v311_v39, %v310_v35  ;;  %v192_v51 = vsub.f32 %v829_v33, %v1020_v7  ;;  %v193_v55 = vsub.f32 %v837_v37, %v1020_v7 }
 0x127   :  { %406 = vmatmul.bf16.vlgmr.msra.gmra.mxu0 %v318_v38  ;;  %426 = vmatmul.bf16.vlgmr.msra.gmra.mxu1 %v322_v40  ;;  %v200_v56 = vsub.f32 %v893_v4, %v1020_v7  ;;  %v201_v0 = vsub.f32 %v901_v10, %v1020_v7  ;;  %v216_v2 = vmul.f32 %v1044_v54, %v184_v46 }
 0x128   :  { %446 = vmatmul.bf16.vlgmr.msra.gmra.mxu2 %v326_v43  ;;  %466 = vmatmul.bf16.vlgmr.msra.gmra.mxu3 %v330_v44  ;;  %v217_v1 = vmul.f32 %v1044_v54, %v185_v48  ;;  %v208_v6 = vsub.f32 %v957_v47, %v1020_v7  ;;  %v209_v33 = vsub.f32 %v965_v52, %v1020_v7 }
 0x129   :  { %v224_v59 = vmul.f32 %v1044_v54, %v192_v51  ;;  %v225_v37 = vmul.f32 %v1044_v54, %v193_v55  ;;  %v232_v4 = vmul.f32 %v1044_v54, %v200_v56  ;;  %v233_v60 = vmul.f32 %v1044_v54, %v201_v0 }
 0x12a   :  { %v240_v10 = vmul.f32 %v1044_v54, %v208_v6  ;;  %v241_v29 = vmul.f32 %v1044_v54, %v209_v33  ;;  %v252_v57 = vmul.f32 %v1040_v50, %v216_v2  ;;  %v253_v62 = vmul.f32 %v1040_v50, %v217_v1 }
 0x12b   :  { %v260_v47 = vmul.f32 %v1040_v50, %v224_v59  ;;  %v261_v52 = vmul.f32 %v1040_v50, %v225_v37  ;;  %v268_v61 = vmul.f32 %v1040_v50, %v232_v4  ;;  %v269_v36 = vmul.f32 %v1040_v50, %v233_v60 }
 0x12c   :  { %v276_v3 = vmul.f32 %v1040_v50, %v240_v10  ;;  %v277_v5 = vmul.f32 %v1040_v50, %v241_v29  ;;  %v288_v11 = vadd.f32 %v1059_v25, %v252_v57  ;;  %v289_v12 = vadd.f32 %v1059_v25, %v253_v62 }
 0x12d   :  { %v296_v14 = vadd.f32 %v1059_v25, %v260_v47  ;;  %v297_v18 = vadd.f32 %v1059_v25, %v261_v52  ;;  %v304_v42 = vadd.f32 %v1059_v25, %v268_v61  ;;  %v305_v19 = vadd.f32 %v1059_v25, %v269_v36 }
 0x12e   :  { %v312_v22 = vadd.f32 %v1059_v25, %v276_v3  ;;  %v313_v23 = vadd.f32 %v1059_v25, %v277_v5  ;;  %v319_v24 = vpack.c.bf16 %v289_v12, %v288_v11  ;;  %v186_v32 = vsub.f32 %v781_v9, %v1020_v7 }
 0x12f   :  { %v323_v27 = vpack.c.bf16 %v297_v18, %v296_v14  ;;  %v327_v28 = vpack.c.bf16 %v305_v19, %v304_v42  ;;  %v187_v34 = vsub.f32 %v789_v13, %v1020_v7  ;;  %v194_v35 = vsub.f32 %v845_v41, %v1020_v7 }
 0x130   :  { %v331_v30 = vpack.c.bf16 %v313_v23, %v312_v22  ;;  %v195_v38 = vsub.f32 %v853_v45, %v1020_v7  ;;  %v202_v39 = vsub.f32 %v909_v15, %v1020_v7  ;;  %v203_v40 = vsub.f32 %v917_v20, %v1020_v7 }
 0x131   :  { %v211_v9 = vsub.f32 %v981_v63, %v1020_v7  ;;  %v218_v13 = vmul.f32 %v1044_v54, %v186_v32  ;;  %v219_v43 = vmul.f32 %v1044_v54, %v187_v34  ;;  %v210_v41 = vsub.f32 %v973_v58, %v1020_v7 }
 0x132   :  { %v226_v44 = vmul.f32 %v1044_v54, %v194_v35  ;;  %v227_v45 = vmul.f32 %v1044_v54, %v195_v38  ;;  %v234_v15 = vmul.f32 %v1044_v54, %v202_v39  ;;  %v235_v46 = vmul.f32 %v1044_v54, %v203_v40 }
 0x133   :  { %v242_v20 = vmul.f32 %v1044_v54, %v210_v41  ;;  %v243_v63 = vmul.f32 %v1044_v54, %v211_v9  ;;  %v254_v48 = vmul.f32 %v1040_v50, %v218_v13  ;;  %v255_v51 = vmul.f32 %v1040_v50, %v219_v43 }
 0x134   :  { %v262_v55 = vmul.f32 %v1040_v50, %v226_v44  ;;  %v263_v58 = vmul.f32 %v1040_v50, %v227_v45  ;;  %v270_v56 = vmul.f32 %v1040_v50, %v234_v15  ;;  %v271_v0 = vmul.f32 %v1040_v50, %v235_v46 }
 0x135   :  { %v278_v2 = vmul.f32 %v1040_v50, %v242_v20  ;;  %v279_v1 = vmul.f32 %v1040_v50, %v243_v63  ;;  %v290_v6 = vadd.f32 %v1059_v25, %v254_v48  ;;  %v291_v33 = vadd.f32 %v1059_v25, %v255_v51 }
 0x136   :  { %v298_v59 = vadd.f32 %v1059_v25, %v262_v55  ;;  %v299_v37 = vadd.f32 %v1059_v25, %v263_v58  ;;  %v306_v4 = vadd.f32 %v1059_v25, %v270_v56  ;;  %v307_v60 = vadd.f32 %v1059_v25, %v271_v0 }
 0x137   :  { %411 = vmatmul.bf16.gmra.mxu0 %v319_v24  ;;  %431 = vmatmul.bf16.gmra.mxu1 %v323_v27  ;;  %v314_v10 = vadd.f32 %v1059_v25, %v278_v2  ;;  %v315_v29 = vadd.f32 %v1059_v25, %v279_v1  ;;  %v320_v57 = vpack.c.bf16 %v291_v33, %v290_v6 }
 0x138   :  { %451 = vmatmul.bf16.gmra.mxu2 %v327_v28  ;;  %471 = vmatmul.bf16.gmra.mxu3 %v331_v30  ;;  %v324_v62 = vpack.c.bf16 %v299_v37, %v298_v59  ;;  %v328_v47 = vpack.c.bf16 %v307_v60, %v306_v4  ;;  %v188_v61 = vsub.f32 %v797_v17, %v1020_v7 }
 0x139   :  { %v332_v52 = vpack.c.bf16 %v315_v29, %v314_v10  ;;  %v189_v36 = vsub.f32 %v805_v21, %v1020_v7  ;;  %v196_v3 = vsub.f32 %v861_v49, %v1020_v7  ;;  %v197_v5 = vsub.f32 %v869_v53, %v1020_v7 }
 0x13a   :  { %v204_v11 = vsub.f32 %v925_v26, %v1020_v7  ;;  %v205_v12 = vsub.f32 %v933_v31, %v1020_v7  ;;  %v212_v17 = vsub.f32 %v989_v8, %v1020_v7  ;;  %v213_v21 = vsub.f32 %v997_v16, %v1020_v7 }
 0x13b   :  { %v220_v49 = vmul.f32 %v1044_v54, %v188_v61  ;;  %v221_v14 = vmul.f32 %v1044_v54, %v189_v36  ;;  %v228_v18 = vmul.f32 %v1044_v54, %v196_v3  ;;  %v229_v53 = vmul.f32 %v1044_v54, %v197_v5 }
 0x13c   :  { %v236_v26 = vmul.f32 %v1044_v54, %v204_v11  ;;  %v237_v42 = vmul.f32 %v1044_v54, %v205_v12  ;;  %v245_v31 = vmul.f32 %v1044_v54, %v213_v21  ;;  %v244_v8 = vmul.f32 %v1044_v54, %v212_v17 }
 0x13d   :  { %v256_v19 = vmul.f32 %v1040_v50, %v220_v49  ;;  %v257_v16 = vmul.f32 %v1040_v50, %v221_v14  ;;  %v264_v7 = vmul.f32 %v1040_v50, %v228_v18  ;;  %v265_v22 = vmul.f32 %v1040_v50, %v229_v53 }
 0x13e   :  { %v272_v23 = vmul.f32 %v1040_v50, %v236_v26  ;;  %v273_v24 = vmul.f32 %v1040_v50, %v237_v42  ;;  %v280_v27 = vmul.f32 %v1040_v50, %v244_v8  ;;  %v281_v28 = vmul.f32 %v1040_v50, %v245_v31 }
 0x13f   :  { %v292_v30 = vadd.f32 %v1059_v25, %v256_v19  ;;  %v293_v54 = vadd.f32 %v1059_v25, %v257_v16  ;;  %v300_v32 = vadd.f32 %v1059_v25, %v264_v7  ;;  %v301_v34 = vadd.f32 %v1059_v25, %v265_v22 }
 0x140   :  { %v308_v35 = vadd.f32 %v1059_v25, %v272_v23  ;;  %v309_v38 = vadd.f32 %v1059_v25, %v273_v24  ;;  %v316_v39 = vadd.f32 %v1059_v25, %v280_v27  ;;  %v317_v40 = vadd.f32 %v1059_v25, %v281_v28 }
 0x141   :  { %v321_v9 = vpack.c.bf16 %v293_v54, %v292_v30  ;;  %v325_v13 = vpack.c.bf16 %v301_v34, %v300_v32 }
 0x142   :  { %v329_v43 = vpack.c.bf16 %v309_v38, %v308_v35  ;;  %v333_v50 = vpack.c.bf16 %v317_v40, %v316_v39 }
 0x147   :  { %416 = vmatmul.bf16.gmra.mxu0 %v320_v57  ;;  %436 = vmatmul.bf16.gmra.mxu1 %v324_v62 }
 0x148   :  { %456 = vmatmul.bf16.gmra.mxu2 %v328_v47  ;;  %476 = vmatmul.bf16.gmra.mxu3 %v332_v52 }
 0x157   :  { %421 = vmatmul.bf16.gmra.mxu0 %v321_v9  ;;  %441 = vmatmul.bf16.gmra.mxu1 %v325_v13 }
 0x158   :  { %461 = vmatmul.bf16.gmra.mxu2 %v329_v43  ;;  %481 = vmatmul.bf16.gmra.mxu3 %v333_v50 }
 0x1a4   :  { %v407_v41 = vpop.f32.mrf.mxu0  ;;  %v427_v44 = vpop.f32.mrf.mxu1 }
 0x1ab   :  { %v447_v45 = vpop.f32.mrf.mxu2  ;;  %v467_v15 = vpop.f32.mrf.mxu3 }
 0x1ac   :  { %v409_v46 = vpop.f32.mrf.mxu0  ;;  %v429_v63 = vpop.f32.mrf.mxu1 }
 0x1ad   :  { %v598_v20 = vpack.c.bf16 %v409_v46, %v407_v41  ;;  %v618_v48 = vpack.c.bf16 %v429_v63, %v427_v44 }
 0x1af   :  { %599 = vst [vmem:[%s1257_s4] sm:$0xff] %v598_v20  }
 0x1b0   :  { %678 = vst [vmem:[%s1257_s4 + $0x20] sm:$0xff] %v618_v48  }
 0x1b3   :  { %v449_v25 = vpop.f32.mrf.mxu2  ;;  %v469_v55 = vpop.f32.mrf.mxu3 }
 0x1b4   :  { %v638_v51 = vpack.c.bf16 %v449_v25, %v447_v45  ;;  %v412_v58 = vpop.f32.mrf.mxu0  ;;  %v658_v56 = vpack.c.bf16 %v469_v55, %v467_v15  ;;  %v432_v0 = vpop.f32.mrf.mxu1 }
 0x1b6   :  { %682 = vst [vmem:[%s1257_s4 + $0x40] sm:$0xff] %v638_v51  }
 0x1b7   :  { %686 = vst [vmem:[%s1257_s4 + $0x60] sm:$0xff] %v658_v56  }
 0x1bb   :  { %v452_v2 = vpop.f32.mrf.mxu2  ;;  %v472_v1 = vpop.f32.mrf.mxu3 }
 0x1bc   :  { %v414_v6 = vpop.f32.mrf.mxu0  ;;  %v434_v59 = vpop.f32.mrf.mxu1 }
 0x1bd   :  { %v603_v33 = vpack.c.bf16 %v414_v6, %v412_v58  ;;  %v623_v37 = vpack.c.bf16 %v434_v59, %v432_v0 }
 0x1bf   :  { %675 = vst [vmem:[%s1257_s4 + $0x8] sm:$0xff] %v603_v33  }
 0x1c0   :  { %679 = vst [vmem:[%s1257_s4 + $0x28] sm:$0xff] %v623_v37  }
 0x1c3   :  { %v454_v4 = vpop.f32.mrf.mxu2  ;;  %v474_v10 = vpop.f32.mrf.mxu3 }
 0x1c4   :  { %v643_v60 = vpack.c.bf16 %v454_v4, %v452_v2  ;;  %v417_v29 = vpop.f32.mrf.mxu0  ;;  %v663_v57 = vpack.c.bf16 %v474_v10, %v472_v1  ;;  %v437_v62 = vpop.f32.mrf.mxu1 }
 0x1c6   :  { %683 = vst [vmem:[%s1257_s4 + $0x48] sm:$0xff] %v643_v60  }
 0x1c7   :  { %687 = vst [vmem:[%s1257_s4 + $0x68] sm:$0xff] %v663_v57  }
 0x1cb   :  { %v457_v47 = vpop.f32.mrf.mxu2  ;;  %v477_v52 = vpop.f32.mrf.mxu3 }
 0x1cc   :  { %v419_v61 = vpop.f32.mrf.mxu0  ;;  %v439_v3 = vpop.f32.mrf.mxu1 }
 0x1cd   :  { %v608_v36 = vpack.c.bf16 %v419_v61, %v417_v29  ;;  %v628_v5 = vpack.c.bf16 %v439_v3, %v437_v62 }
 0x1cf   :  { %676 = vst [vmem:[%s1257_s4 + $0x10] sm:$0xff] %v608_v36  }
 0x1d0   :  { %680 = vst [vmem:[%s1257_s4 + $0x30] sm:$0xff] %v628_v5  }
 0x1d3   :  { %v459_v11 = vpop.f32.mrf.mxu2  ;;  %v479_v17 = vpop.f32.mrf.mxu3 }
 0x1d4   :  { %v648_v12 = vpack.c.bf16 %v459_v11, %v457_v47  ;;  %v422_v21 = vpop.f32.mrf.mxu0  ;;  %v668_v49 = vpack.c.bf16 %v479_v17, %v477_v52  ;;  %v442_v14 = vpop.f32.mrf.mxu1 }
 0x1d6   :  { %684 = vst [vmem:[%s1257_s4 + $0x50] sm:$0xff] %v648_v12  }
 0x1d7   :  { %688 = vst [vmem:[%s1257_s4 + $0x70] sm:$0xff] %v668_v49  }
 0x1db   :  { %v462_v18 = vpop.f32.mrf.mxu2  ;;  %v482_v53 = vpop.f32.mrf.mxu3 }
 0x1dc   :  { %v424_v26 = vpop.f32.mrf.mxu0  ;;  %v444_v31 = vpop.f32.mrf.mxu1 }
 0x1dd   :  { %v613_v42 = vpack.c.bf16 %v424_v26, %v422_v21  ;;  %v633_v8 = vpack.c.bf16 %v444_v31, %v442_v14 }
 0x1df   :  { %677 = vst [vmem:[%s1257_s4 + $0x18] sm:$0xff] %v613_v42  }
 0x1e0   :  { %681 = vst [vmem:[%s1257_s4 + $0x38] sm:$0xff] %v633_v8  }
 0x1e3   :  { %v464_v19 = vpop.f32.mrf.mxu2  ;;  %v484_v7 = vpop.f32.mrf.mxu3 }
 0x1e4   :  { %v653_v16 = vpack.c.bf16 %v464_v19, %v462_v18  ;;  %v673_v22 = vpack.c.bf16 %v484_v7, %v482_v53 }
 0x1e6   :  { %685 = vst [vmem:[%s1257_s4 + $0x58] sm:$0xff] %v653_v16  }
 0x1e7   :  { %689 = vst [vmem:[%s1257_s4 + $0x78] sm:$0xff] %v673_v22  }

// kernel: gnn_forward_pallas.7
= control target key start
LH: loop header
LB: loop body
LE: loop exit
PB: predicated region body
PF: predicated region fallthrough
CT: control target
= control target key end

     0   :  { %s734_s1 = inlined_call_operand.vmem [shape: bf16[128,128], index: 1, kind: input, shape index: {}]   ;;  %s735_s0 = inlined_call_operand.vmem [shape: bf16[256,128], index: 0, kind: input, shape index: {}]   ;;  %s736_s2 = inlined_call_operand.vmem [shape: bf16[256,128], index: 2, kind: output, shape index: {}]  }
   0x1   :  { %v479_v0 = vld [vmem:[%s734_s1 + $0x38] sm:$0xff]  ;;  %v478_v1 = vld [vmem:[%s734_s1 + $0x30] sm:$0xff]  ;;  %v477_v2 = vld [vmem:[%s734_s1 + $0x28] sm:$0xff] }
   0x2   :  { %203 = vmatpush.bf16.msra.mxu0 %v479_v0  ;;  %575 = vmatpush.bf16.msra.mxu1 %v479_v0  ;;  %v476_v3 = vld [vmem:[%s734_s1 + $0x20] sm:$0xff]  ;;  %v475_v4 = vld [vmem:[%s734_s1 + $0x18] sm:$0xff]  ;;  %v474_v5 = vld [vmem:[%s734_s1 + $0x10] sm:$0xff] }
   0x3   :  { %576 = vmatpush.bf16.msra.mxu2 %v479_v0  ;;  %577 = vmatpush.bf16.msra.mxu3 %v479_v0  ;;  %v473_v6 = vld [vmem:[%s734_s1 + $0x8] sm:$0xff]  ;;  %v472_v7 = vld [vmem:[%s734_s1] sm:$0xff]  ;;  %v458_v16 = vld [vmem:[%s735_s0 + $0x10] sm:$0xff] }
   0x4   :  { %v456_v8 = vld [vmem:[%s735_s0] sm:$0xff]  ;;  %v457_v12 = vld [vmem:[%s735_s0 + $0x8] sm:$0xff]  ;;  %v462_v17 = vld [vmem:[%s735_s0 + $0x30] sm:$0xff] }
   0x5   :  { %v460_v9 = vld [vmem:[%s735_s0 + $0x20] sm:$0xff]  ;;  %v461_v13 = vld [vmem:[%s735_s0 + $0x28] sm:$0xff]  ;;  %v466_v18 = vld [vmem:[%s735_s0 + $0x50] sm:$0xff] }
   0x6   :  { %204 = vmatpush.bf16.msra.mxu0 %v478_v1  ;;  %578 = vmatpush.bf16.msra.mxu1 %v478_v1  ;;  %v464_v10 = vld [vmem:[%s735_s0 + $0x40] sm:$0xff]  ;;  %v465_v14 = vld [vmem:[%s735_s0 + $0x48] sm:$0xff]  ;;  %v470_v19 = vld [vmem:[%s735_s0 + $0x70] sm:$0xff] }
   0x7   :  { %579 = vmatpush.bf16.msra.mxu2 %v478_v1  ;;  %580 = vmatpush.bf16.msra.mxu3 %v478_v1  ;;  %v468_v11 = vld [vmem:[%s735_s0 + $0x60] sm:$0xff]  ;;  %v469_v15 = vld [vmem:[%s735_s0 + $0x68] sm:$0xff]  ;;  %v459_v20 = vld [vmem:[%s735_s0 + $0x18] sm:$0xff] }
   0x8   :  { %v463_v21 = vld [vmem:[%s735_s0 + $0x38] sm:$0xff] }
   0x9   :  { %v467_v22 = vld [vmem:[%s735_s0 + $0x58] sm:$0xff] }
   0xa   :  { %205 = vmatpush.bf16.msra.mxu0 %v477_v2  ;;  %581 = vmatpush.bf16.msra.mxu1 %v477_v2  ;;  %v471_v23 = vld [vmem:[%s735_s0 + $0x78] sm:$0xff] }
   0xb   :  { %582 = vmatpush.bf16.msra.mxu2 %v477_v2  ;;  %583 = vmatpush.bf16.msra.mxu3 %v477_v2 }
   0xe   :  { %206 = vmatpush.bf16.msra.mxu0 %v476_v3  ;;  %584 = vmatpush.bf16.msra.mxu1 %v476_v3 }
   0xf   :  { %585 = vmatpush.bf16.msra.mxu2 %v476_v3  ;;  %586 = vmatpush.bf16.msra.mxu3 %v476_v3 }
  0x12   :  { %207 = vmatpush.bf16.msra.mxu0 %v475_v4  ;;  %587 = vmatpush.bf16.msra.mxu1 %v475_v4 }
  0x13   :  { %588 = vmatpush.bf16.msra.mxu2 %v475_v4  ;;  %589 = vmatpush.bf16.msra.mxu3 %v475_v4 }
  0x16   :  { %208 = vmatpush.bf16.msra.mxu0 %v474_v5  ;;  %590 = vmatpush.bf16.msra.mxu1 %v474_v5 }
  0x17   :  { %591 = vmatpush.bf16.msra.mxu2 %v474_v5  ;;  %592 = vmatpush.bf16.msra.mxu3 %v474_v5 }
  0x1a   :  { %209 = vmatpush.bf16.msra.mxu0 %v473_v6  ;;  %593 = vmatpush.bf16.msra.mxu1 %v473_v6 }
  0x1b   :  { %594 = vmatpush.bf16.msra.mxu2 %v473_v6  ;;  %595 = vmatpush.bf16.msra.mxu3 %v473_v6 }
  0x1e   :  { %210 = vmatpush.bf16.msra.mxu0 %v472_v7  ;;  %596 = vmatpush.bf16.msra.mxu1 %v472_v7 }
  0x1f   :  { %597 = vmatpush.bf16.msra.mxu2 %v472_v7  ;;  %598 = vmatpush.bf16.msra.mxu3 %v472_v7 }
  0x21   :  { %211 = vmatmul.bf16.vlgmr.msra.gmra.mxu0 %v456_v8  ;;  %231 = vmatmul.bf16.vlgmr.msra.gmra.mxu1 %v460_v9 }
  0x22   :  { %251 = vmatmul.bf16.vlgmr.msra.gmra.mxu2 %v464_v10  ;;  %271 = vmatmul.bf16.vlgmr.msra.gmra.mxu3 %v468_v11 }
  0x31   :  { %216 = vmatmul.bf16.gmra.mxu0 %v457_v12  ;;  %236 = vmatmul.bf16.gmra.mxu1 %v461_v13 }
  0x32   :  { %256 = vmatmul.bf16.gmra.mxu2 %v465_v14  ;;  %276 = vmatmul.bf16.gmra.mxu3 %v469_v15 }
  0x41   :  { %221 = vmatmul.bf16.gmra.mxu0 %v458_v16  ;;  %241 = vmatmul.bf16.gmra.mxu1 %v462_v17 }
  0x42   :  { %261 = vmatmul.bf16.gmra.mxu2 %v466_v18  ;;  %281 = vmatmul.bf16.gmra.mxu3 %v470_v19 }
  0x51   :  { %226 = vmatmul.bf16.gmra.mxu0 %v459_v20  ;;  %246 = vmatmul.bf16.gmra.mxu1 %v463_v21 }
  0x52   :  { %266 = vmatmul.bf16.gmra.mxu2 %v467_v22  ;;  %286 = vmatmul.bf16.gmra.mxu3 %v471_v23 }
  0x9e   :  { %v212_v24 = vpop.f32.mrf.mxu0  ;;  %v232_v25 = vpop.f32.mrf.mxu1 }
  0xa5   :  { %v252_v26 = vpop.f32.mrf.mxu2  ;;  %v272_v27 = vpop.f32.mrf.mxu3 }
  0xa6   :  { %v214_v28 = vpop.f32.mrf.mxu0  ;;  %v234_v29 = vpop.f32.mrf.mxu1 }
  0xa7   :  { %v483_v30 = vpack.c.bf16 %v214_v28, %v212_v24  ;;  %v503_v31 = vpack.c.bf16 %v234_v29, %v232_v25 }
  0xa9   :  { %484 = vst [vmem:[%s736_s2] sm:$0xff] %v483_v30  }
  0xaa   :  { %563 = vst [vmem:[%s736_s2 + $0x20] sm:$0xff] %v503_v31  }
  0xad   :  { %v254_v32 = vpop.f32.mrf.mxu2  ;;  %v274_v33 = vpop.f32.mrf.mxu3 }
  0xae   :  { %v523_v34 = vpack.c.bf16 %v254_v32, %v252_v26  ;;  %v543_v35 = vpack.c.bf16 %v274_v33, %v272_v27  ;;  %v217_v36 = vpop.f32.mrf.mxu0  ;;  %v237_v37 = vpop.f32.mrf.mxu1 }
  0xb0   :  { %567 = vst [vmem:[%s736_s2 + $0x40] sm:$0xff] %v523_v34  }
  0xb1   :  { %571 = vst [vmem:[%s736_s2 + $0x60] sm:$0xff] %v543_v35  }
  0xb5   :  { %v257_v38 = vpop.f32.mrf.mxu2  ;;  %v277_v39 = vpop.f32.mrf.mxu3 }
  0xb6   :  { %v219_v40 = vpop.f32.mrf.mxu0  ;;  %v239_v41 = vpop.f32.mrf.mxu1 }
  0xb7   :  { %v488_v42 = vpack.c.bf16 %v219_v40, %v217_v36  ;;  %v508_v43 = vpack.c.bf16 %v239_v41, %v237_v37 }
  0xb9   :  { %560 = vst [vmem:[%s736_s2 + $0x8] sm:$0xff] %v488_v42  }
  0xba   :  { %564 = vst [vmem:[%s736_s2 + $0x28] sm:$0xff] %v508_v43  }
  0xbd   :  { %v259_v44 = vpop.f32.mrf.mxu2  ;;  %v279_v45 = vpop.f32.mrf.mxu3 }
  0xbe   :  { %v528_v46 = vpack.c.bf16 %v259_v44, %v257_v38  ;;  %v548_v47 = vpack.c.bf16 %v279_v45, %v277_v39  ;;  %v222_v48 = vpop.f32.mrf.mxu0  ;;  %v242_v49 = vpop.f32.mrf.mxu1 }
  0xc0   :  { %568 = vst [vmem:[%s736_s2 + $0x48] sm:$0xff] %v528_v46  }
  0xc1   :  { %572 = vst [vmem:[%s736_s2 + $0x68] sm:$0xff] %v548_v47  }
  0xc5   :  { %v262_v50 = vpop.f32.mrf.mxu2  ;;  %v282_v51 = vpop.f32.mrf.mxu3 }
  0xc6   :  { %v224_v52 = vpop.f32.mrf.mxu0  ;;  %v244_v53 = vpop.f32.mrf.mxu1 }
  0xc7   :  { %v493_v54 = vpack.c.bf16 %v224_v52, %v222_v48  ;;  %v513_v55 = vpack.c.bf16 %v244_v53, %v242_v49 }
  0xc9   :  { %561 = vst [vmem:[%s736_s2 + $0x10] sm:$0xff] %v493_v54  }
  0xca   :  { %565 = vst [vmem:[%s736_s2 + $0x30] sm:$0xff] %v513_v55  }
  0xcd   :  { %v264_v56 = vpop.f32.mrf.mxu2  ;;  %v284_v57 = vpop.f32.mrf.mxu3 }
  0xce   :  { %v533_v58 = vpack.c.bf16 %v264_v56, %v262_v50  ;;  %v553_v59 = vpack.c.bf16 %v284_v57, %v282_v51  ;;  %v227_v60 = vpop.f32.mrf.mxu0  ;;  %v247_v61 = vpop.f32.mrf.mxu1 }
  0xd0   :  { %569 = vst [vmem:[%s736_s2 + $0x50] sm:$0xff] %v533_v58  }
  0xd1   :  { %573 = vst [vmem:[%s736_s2 + $0x70] sm:$0xff] %v553_v59  }
  0xd5   :  { %v267_v62 = vpop.f32.mrf.mxu2  ;;  %v287_v63 = vpop.f32.mrf.mxu3 }
  0xd6   :  { %v229_v0 = vpop.f32.mrf.mxu0  ;;  %v249_v1 = vpop.f32.mrf.mxu1 }
  0xd7   :  { %v498_v2 = vpack.c.bf16 %v229_v0, %v227_v60  ;;  %v518_v3 = vpack.c.bf16 %v249_v1, %v247_v61 }
  0xd9   :  { %562 = vst [vmem:[%s736_s2 + $0x18] sm:$0xff] %v498_v2  }
  0xda   :  { %566 = vst [vmem:[%s736_s2 + $0x38] sm:$0xff] %v518_v3  }
  0xdd   :  { %v269_v4 = vpop.f32.mrf.mxu2  ;;  %v289_v5 = vpop.f32.mrf.mxu3 }
  0xde   :  { %v538_v6 = vpack.c.bf16 %v269_v4, %v267_v62  ;;  %v558_v7 = vpack.c.bf16 %v289_v5, %v287_v63 }
  0xe0   :  { %570 = vst [vmem:[%s736_s2 + $0x58] sm:$0xff] %v538_v6  }
  0xe1   :  { %574 = vst [vmem:[%s736_s2 + $0x78] sm:$0xff] %v558_v7  }

// kernel: gnn_forward_pallas.8
= control target key start
LH: loop header
LB: loop body
LE: loop exit
PB: predicated region body
PF: predicated region fallthrough
CT: control target
= control target key end

     0   :  { %s885_s12 = smov 0   ;;  %s1070_s0 = inlined_call_operand.vmem [shape: bf16[256,256], index: 0, kind: input, shape index: {}]   ;;  %s1071_s1 = inlined_call_operand.vmem [shape: bf16[256,128], index: 1, kind: input, shape index: {}]   ;;  %s1072_s2 = inlined_call_operand.vmem [shape: f32[1,128], index: 2, kind: input, shape index: {}]   ;;  %s1073_s3 = inlined_call_operand.vmem [shape: f32[256,128], index: 3, kind: output, shape index: {}]  }
   0x1 LB: > { %s658_s13 = sadd.s32 4294967295, %s863_s12   ;;  %p662_p0 = scmp.ge.s32.totalorder %s863_s12, 1  ;;  %s863_s12 = sphi %s885_s12, %s13_s12  }
   0x2   : > { %p139_p1 = scmp.lt.s32.totalorder %s863_s12, 3 }
   0x4   : > { %p140_p2 = pnand %p662_p0, %p139_p1 }
   0x5   : > { %s663_s26 = sshll.u32 (!%p140_p2), %s658_s13, 4  ;;  %s796_s27 = sshll.u32 (!%p140_p2), %s658_s13, 7 }
   0x6   : > { %143 = sbr.rel (%p140_p2) target bundleno = 239 (0xef), region = 32  ;;  %p165_p3 = scmp.lt.s32.totalorder (!%p140_p2), %s663_s26, 31 }
   0xb   : > { %v823_v0 = vld [vmem:[%s1071_s1 + $0x38] sm:$0xff]  ;;  %v822_v2 = vld [vmem:[%s1071_s1 + $0x30] sm:$0xff]  ;;  %v821_v4 = vld [vmem:[%s1071_s1 + $0x28] sm:$0xff]  ;;  %s1075_s26 = smov (!%p165_p3, %s663_s26), 31 }
   0xc   : > { %v831_v1 = vld [vmem:[%s1071_s1 + $0x78] sm:$0xff]  ;;  %405 = vmatpush.bf16.msra.mxu0 %v823_v0  ;;  %832 = vmatpush.bf16.msra.mxu2 %v823_v0  ;;  %v830_v3 = vld [vmem:[%s1071_s1 + $0x70] sm:$0xff]  ;;  %v829_v5 = vld [vmem:[%s1071_s1 + $0x68] sm:$0xff]  ;;  %s799_s14 = sshll.u32 %s1075_s26, 3  ;;  %v519_v0 = vlaneseq }
   0xd   : > { %454 = vmatpush.bf16.msra.mxu1 %v831_v1  ;;  %840 = vmatpush.bf16.msra.mxu3 %v831_v1  ;;  %v820_v6 = vld [vmem:[%s1071_s1 + $0x20] sm:$0xff]  ;;  %v819_v8 = vld [vmem:[%s1071_s1 + $0x18] sm:$0xff]  ;;  %v818_v10 = vld [vmem:[%s1071_s1 + $0x10] sm:$0xff]  ;;  %s942_s19 = scalar_lea.vmem %s1070_s0, %s799_s14  ;;  %s1006_s4 = scalar_lea.vmem %s1073_s3, %s799_s14 }
   0xe   : > { %v828_v7 = vld [vmem:[%s1071_s1 + $0x60] sm:$0xff]  ;;  %v827_v9 = vld [vmem:[%s1071_s1 + $0x58] sm:$0xff]  ;;  %v826_v11 = vld [vmem:[%s1071_s1 + $0x50] sm:$0xff] }
   0xf   : > { %v817_v12 = vld [vmem:[%s1071_s1 + $0x8] sm:$0xff]  ;;  %v816_v14 = vld [vmem:[%s1071_s1] sm:$0xff]  ;;  %v678_v28 = vld [vmem:[%s942_s19 + $0x10] sm:$0xf] }
  0x10   : > { %406 = vmatpush.bf16.msra.mxu0 %v822_v2  ;;  %833 = vmatpush.bf16.msra.mxu2 %v822_v2  ;;  %v825_v13 = vld [vmem:[%s1071_s1 + $0x48] sm:$0xff]  ;;  %v824_v15 = vld [vmem:[%s1071_s1 + $0x40] sm:$0xff]  ;;  %v803_v29 = vld [vmem:[%s942_s19 + $0x14] sm:$0xf0]  ;;  %v992_v2 = vstv %s796_s27 }
  0x11   : > { %455 = vmatpush.bf16.msra.mxu1 %v830_v3  ;;  %841 = vmatpush.bf16.msra.mxu3 %v830_v3  ;;  %v670_v16 = vld [vmem:[%s942_s19] sm:$0xf]  ;;  %v801_v17 = vld [vmem:[%s942_s19 + $0x4] sm:$0xf0]  ;;  %v800_v20 = vld [vmem:[%s942_s19 + $0x4] sm:$0xf]  ;;  %v679_v36 = vor.u32 %v803_v29, %v678_v28 }
  0x12   : > { %v702_v18 = vld [vmem:[%s942_s19 + $0x40] sm:$0xf]  ;;  %v809_v19 = vld [vmem:[%s942_s19 + $0x44] sm:$0xf0]  ;;  %v672_v21 = vld [vmem:[%s942_s19 + $0x8] sm:$0xf0]  ;;  %v671_v24 = vor.u32 %v801_v17, %v670_v16 }
  0x13   : > { %v808_v22 = vld [vmem:[%s942_s19 + $0x44] sm:$0xf]  ;;  %v704_v23 = vld [vmem:[%s942_s19 + $0x48] sm:$0xf0]  ;;  %v703_v25 = vor.u32 %v809_v19, %v702_v18  ;;  %v675_v26 = vor.u32 %v800_v20, %v672_v21  ;;  %v710_v30 = vld [vmem:[%s942_s19 + $0x50] sm:$0xf] }
  0x14   : > { %407 = vmatpush.bf16.msra.mxu0 %v821_v4  ;;  %834 = vmatpush.bf16.msra.mxu2 %v821_v4  ;;  %v707_v27 = vor.u32 %v808_v22, %v704_v23  ;;  %v811_v31 = vld [vmem:[%s942_s19 + $0x54] sm:$0xf0]  ;;  %v802_v32 = vld [vmem:[%s942_s19 + $0x14] sm:$0xf]  ;;  %v680_v33 = vld [vmem:[%s942_s19 + $0x18] sm:$0xf0] }
  0x15   : > { %456 = vmatpush.bf16.msra.mxu1 %v829_v5  ;;  %842 = vmatpush.bf16.msra.mxu3 %v829_v5  ;;  %v810_v34 = vld [vmem:[%s942_s19 + $0x54] sm:$0xf]  ;;  %v712_v35 = vld [vmem:[%s942_s19 + $0x58] sm:$0xf0]  ;;  %v711_v37 = vor.u32 %v811_v31, %v710_v30  ;;  %v683_v38 = vor.u32 %v802_v32, %v680_v33  ;;  %v686_v40 = vld [vmem:[%s942_s19 + $0x20] sm:$0xf] }
  0x16   : > { %v715_v39 = vor.u32 %v810_v34, %v712_v35  ;;  %v805_v41 = vld [vmem:[%s942_s19 + $0x24] sm:$0xf0]  ;;  %v718_v42 = vld [vmem:[%s942_s19 + $0x60] sm:$0xf]  ;;  %v804_v44 = vld [vmem:[%s942_s19 + $0x24] sm:$0xf] }
  0x17   : > { %v813_v43 = vld [vmem:[%s942_s19 + $0x64] sm:$0xf0]  ;;  %v688_v45 = vld [vmem:[%s942_s19 + $0x28] sm:$0xf0]  ;;  %v812_v46 = vld [vmem:[%s942_s19 + $0x64] sm:$0xf]  ;;  %v687_v48 = vor.u32 %v805_v41, %v686_v40 }
  0x18   : > { %408 = vmatpush.bf16.msra.mxu0 %v820_v6  ;;  %835 = vmatpush.bf16.msra.mxu2 %v820_v6  ;;  %v720_v47 = vld [vmem:[%s942_s19 + $0x68] sm:$0xf0]  ;;  %v719_v49 = vor.u32 %v813_v43, %v718_v42  ;;  %v691_v50 = vor.u32 %v804_v44, %v688_v45  ;;  %v694_v52 = vld [vmem:[%s942_s19 + $0x30] sm:$0xf]  ;;  %v807_v53 = vld [vmem:[%s942_s19 + $0x34] sm:$0xf0] }
  0x19   : > { %457 = vmatpush.bf16.msra.mxu1 %v828_v7  ;;  %843 = vmatpush.bf16.msra.mxu3 %v828_v7  ;;  %v723_v51 = vor.u32 %v812_v46, %v720_v47  ;;  %v726_v54 = vld [vmem:[%s942_s19 + $0x70] sm:$0xf]  ;;  %v815_v55 = vld [vmem:[%s942_s19 + $0x74] sm:$0xf0]  ;;  %v806_v56 = vld [vmem:[%s942_s19 + $0x34] sm:$0xf]  ;;  %v695_v60 = vor.u32 %v807_v53, %v694_v52 }
  0x1a   : > { %v696_v57 = vld [vmem:[%s942_s19 + $0x38] sm:$0xf0]  ;;  %v814_v58 = vld [vmem:[%s942_s19 + $0x74] sm:$0xf]  ;;  %v727_v61 = vor.u32 %v815_v55, %v726_v54  ;;  %v990_v1 = vld [vmem:[%s1072_s2] ss:$0 sm:$0xff] }
  0x1b   : > { %v728_v59 = vld [vmem:[%s942_s19 + $0x78] sm:$0xf0]  ;;  %v699_v62 = vor.u32 %v806_v56, %v696_v57  ;;  %v994_v3 = vshrl.u32 %v519_v0, 7 }
  0x1c   : > { %409 = vmatpush.bf16.msra.mxu0 %v819_v8  ;;  %836 = vmatpush.bf16.msra.mxu2 %v819_v8  ;;  %v731_v63 = vor.u32 %v814_v58, %v728_v59 }
  0x1d   : > { %458 = vmatpush.bf16.msra.mxu1 %v827_v9  ;;  %844 = vmatpush.bf16.msra.mxu3 %v827_v9  ;;  %v538_v5 = vadd.s32 %v992_v2, %v994_v3  ;;  %v528_v8 = vadd.s32 64, %v994_v3  ;;  %v529_v22 = vadd.s32 72, %v994_v3  ;;  %v523_v41 = vadd.s32 24, %v994_v3 }
  0x1e   : > { %v531_v54 = vadd.s32 88, %v994_v3  ;;  %v524_v57 = vadd.s32 32, %v994_v3 }
  0x1f   : > { %vm554_vm0 = vcmp.lt.s32.totalorder %v538_v5, 256  ;;  %v547_v29 = vadd.s32 %v992_v2, %v529_v22 }
  0x20   : > { %410 = vmatpush.bf16.msra.mxu0 %v818_v10  ;;  %837 = vmatpush.bf16.msra.mxu2 %v818_v10  ;;  %v521_v10 = vadd.s32 8, %v994_v3  ;;  %v542_v5 = vadd.s32 %v992_v2, %v524_v57  ;;  %v535_v57 = vadd.s32 120, %v994_v3 }
  0x21   : > { %459 = vmatpush.bf16.msra.mxu1 %v826_v11  ;;  %845 = vmatpush.bf16.msra.mxu3 %v826_v11  ;;  %vm563_vm3 = vcmp.lt.s32.totalorder %v547_v29, 256 }
  0x22   : > { %v539_v18 = vadd.s32 %v992_v2, %v521_v10  ;;  %vm558_vm8 = vcmp.lt.s32.totalorder %v542_v5, 256 }
  0x24   : > { %411 = vmatpush.bf16.msra.mxu0 %v817_v12  ;;  %838 = vmatpush.bf16.msra.mxu2 %v817_v12  ;;  %vm555_vm2 = vcmp.lt.s32.totalorder %v539_v18, 256 }
  0x25   : > { %460 = vmatpush.bf16.msra.mxu1 %v825_v13  ;;  %846 = vmatpush.bf16.msra.mxu3 %v825_v13  ;;  %v546_v13 = vadd.s32 %v992_v2, %v528_v8 }
  0x27   : > { %vm562_vm1 = vcmp.lt.s32.totalorder %v546_v13, 256 }
  0x28   : > { %412 = vmatpush.bf16.msra.mxu0 %v816_v14  ;;  %839 = vmatpush.bf16.msra.mxu2 %v816_v14 }
  0x29   : > { %461 = vmatpush.bf16.msra.mxu1 %v824_v15  ;;  %847 = vmatpush.bf16.msra.mxu3 %v824_v15 }
  0x2b   : > { %413 = vmatmul.bf16.vlgmr.msra.gmra.mxu0 %v671_v24  ;;  %433 = vmatmul.bf16.vlgmr.msra.gmra.mxu2 %v703_v25  ;;  %v522_v25 = vadd.s32 16, %v994_v3 }
  0x2c   : > { %462 = vmatmul.bf16.vlgmr.msra.gmra.mxu1 %v675_v26  ;;  %482 = vmatmul.bf16.vlgmr.msra.gmra.mxu3 %v707_v27 }
  0x2d   : > { %v540_v34 = vadd.s32 %v992_v2, %v522_v25  ;;  %v533_v25 = vadd.s32 104, %v994_v3 }
  0x2f   : > { %vm556_vm4 = vcmp.lt.s32.totalorder %v540_v34, 256 }
  0x3b   : > { %418 = vmatmul.bf16.gmra.mxu0 %v679_v36  ;;  %438 = vmatmul.bf16.gmra.mxu2 %v711_v37 }
  0x3c   : > { %467 = vmatmul.bf16.gmra.mxu1 %v683_v38  ;;  %487 = vmatmul.bf16.gmra.mxu3 %v715_v39  ;;  %v530_v38 = vadd.s32 80, %v994_v3 }
  0x3e   : > { %v548_v45 = vadd.s32 %v992_v2, %v530_v38 }
  0x40   : > { %vm564_vm5 = vcmp.lt.s32.totalorder %v548_v45, 256 }
  0x4b   : > { %423 = vmatmul.bf16.gmra.mxu0 %v687_v48  ;;  %443 = vmatmul.bf16.gmra.mxu2 %v719_v49 }
  0x4c   : > { %472 = vmatmul.bf16.gmra.mxu1 %v691_v50  ;;  %492 = vmatmul.bf16.gmra.mxu3 %v723_v51  ;;  %v541_v50 = vadd.s32 %v992_v2, %v523_v41  ;;  %v534_v41 = vadd.s32 112, %v994_v3 }
  0x4e   : > { %vm557_vm6 = vcmp.lt.s32.totalorder %v541_v50, 256 }
  0x5b   : > { %428 = vmatmul.bf16.gmra.mxu0 %v695_v60  ;;  %448 = vmatmul.bf16.gmra.mxu2 %v727_v61  ;;  %v549_v61 = vadd.s32 %v992_v2, %v531_v54 }
  0x5c   : > { %477 = vmatmul.bf16.gmra.mxu1 %v699_v62  ;;  %497 = vmatmul.bf16.gmra.mxu3 %v731_v63 }
  0x5d   : > { %vm565_vm7 = vcmp.lt.s32.totalorder %v549_v61, 256 }
  0xa8   : > { %v414_v4 = vpop.f32.mrf.mxu0 }
  0xa9   : > { %v415_v6 = vadd.f32 %v990_v1, %v414_v4  ;;  %v463_v7 = vpop.f32.mrf.mxu1 }
  0xab   : > { %v464_v9 = vadd.f32 %v463_v7, %v415_v6 }
  0xad   : > { %v503_v11 = vmax.f32 %v464_v9, 0.0  ;;  %v532_v9 = vadd.s32 96, %v994_v3 }
  0xae   : > { %v434_v12 = vpop.f32.mrf.mxu2 }
  0xaf   : > { %v570_v14 = vsel %vm554_vm0, %v503_v11, 0.0  ;;  %v435_v15 = vadd.f32 %v990_v1, %v434_v12  ;;  %v483_v16 = vpop.f32.mrf.mxu3  ;;  %v525_v12 = vadd.s32 40, %v994_v3 }
  0xb0   : > { %586 = vst [vmem:[%s1006_s4] sm:$0xff] %v570_v14  ;;  %v416_v17 = vpop.f32.mrf.mxu0 }
  0xb1   : > { %v484_v19 = vadd.f32 %v483_v16, %v435_v15  ;;  %v417_v20 = vadd.f32 %v990_v1, %v416_v17  ;;  %v465_v21 = vpop.f32.mrf.mxu1  ;;  %v550_v16 = vadd.s32 %v992_v2, %v532_v9 }
  0xb3   : > { %v511_v23 = vmax.f32 %v484_v19, 0.0  ;;  %v466_v24 = vadd.f32 %v465_v21, %v417_v20  ;;  %v543_v21 = vadd.s32 %v992_v2, %v525_v12  ;;  %vm566_vm9 = vcmp.lt.s32.totalorder %v550_v16, 256 }
  0xb5   : > { %v578_v26 = vsel %vm562_vm1, %v511_v23, 0.0  ;;  %v504_v27 = vmax.f32 %v466_v24, 0.0  ;;  %vm559_vm10 = vcmp.lt.s32.totalorder %v543_v21, 256 }
  0xb6   : > { %594 = vst [vmem:[%s1006_s4 + $0x40] sm:$0xff] %v578_v26  ;;  %v436_v28 = vpop.f32.mrf.mxu2 }
  0xb7   : > { %v571_v30 = vsel %vm555_vm2, %v504_v27, 0.0  ;;  %v437_v31 = vadd.f32 %v990_v1, %v436_v28  ;;  %v485_v32 = vpop.f32.mrf.mxu3  ;;  %v526_v28 = vadd.s32 48, %v994_v3 }
  0xb8   : > { %587 = vst [vmem:[%s1006_s4 + $0x8] sm:$0xff] %v571_v30  ;;  %v419_v33 = vpop.f32.mrf.mxu0 }
  0xb9   : > { %v486_v35 = vadd.f32 %v485_v32, %v437_v31  ;;  %v420_v36 = vadd.f32 %v990_v1, %v419_v33  ;;  %v468_v37 = vpop.f32.mrf.mxu1  ;;  %v551_v32 = vadd.s32 %v992_v2, %v533_v25 }
  0xbb   : > { %v512_v39 = vmax.f32 %v486_v35, 0.0  ;;  %v469_v40 = vadd.f32 %v468_v37, %v420_v36  ;;  %v544_v37 = vadd.s32 %v992_v2, %v526_v28  ;;  %vm567_vm11 = vcmp.lt.s32.totalorder %v551_v32, 256 }
  0xbd   : > { %v579_v42 = vsel %vm563_vm3, %v512_v39, 0.0  ;;  %v505_v43 = vmax.f32 %v469_v40, 0.0  ;;  %vm560_vm12 = vcmp.lt.s32.totalorder %v544_v37, 256 }
  0xbe   : > { %595 = vst [vmem:[%s1006_s4 + $0x48] sm:$0xff] %v579_v42  ;;  %v439_v44 = vpop.f32.mrf.mxu2 }
  0xbf   : > { %v572_v46 = vsel %vm556_vm4, %v505_v43, 0.0  ;;  %v440_v47 = vadd.f32 %v990_v1, %v439_v44  ;;  %v488_v48 = vpop.f32.mrf.mxu3  ;;  %v527_v44 = vadd.s32 56, %v994_v3 }
  0xc0   : > { %588 = vst [vmem:[%s1006_s4 + $0x10] sm:$0xff] %v572_v46  ;;  %v421_v49 = vpop.f32.mrf.mxu0 }
  0xc1   : > { %v489_v51 = vadd.f32 %v488_v48, %v440_v47  ;;  %v422_v52 = vadd.f32 %v990_v1, %v421_v49  ;;  %v470_v53 = vpop.f32.mrf.mxu1  ;;  %v552_v48 = vadd.s32 %v992_v2, %v534_v41 }
  0xc3   : > { %v513_v55 = vmax.f32 %v489_v51, 0.0  ;;  %v471_v56 = vadd.f32 %v470_v53, %v422_v52  ;;  %v545_v53 = vadd.s32 %v992_v2, %v527_v44  ;;  %vm568_vm13 = vcmp.lt.s32.totalorder %v552_v48, 256 }
  0xc5   : > { %v580_v58 = vsel %vm564_vm5, %v513_v55, 0.0  ;;  %v506_v59 = vmax.f32 %v471_v56, 0.0  ;;  %vm561_vm14 = vcmp.lt.s32.totalorder %v545_v53, 256 }
  0xc6   : > { %596 = vst [vmem:[%s1006_s4 + $0x50] sm:$0xff] %v580_v58  ;;  %v441_v60 = vpop.f32.mrf.mxu2 }
  0xc7   : > { %v573_v62 = vsel %vm557_vm6, %v506_v59, 0.0  ;;  %v442_v63 = vadd.f32 %v990_v1, %v441_v60  ;;  %v490_v0 = vpop.f32.mrf.mxu3 }
  0xc8   : > { %589 = vst [vmem:[%s1006_s4 + $0x18] sm:$0xff] %v573_v62  ;;  %v424_v4 = vpop.f32.mrf.mxu0 }
  0xc9   : > { %v491_v6 = vadd.f32 %v490_v0, %v442_v63  ;;  %v425_v7 = vadd.f32 %v990_v1, %v424_v4  ;;  %v473_v8 = vpop.f32.mrf.mxu1  ;;  %v553_v63 = vadd.s32 %v992_v2, %v535_v57 }
  0xcb   : > { %v514_v10 = vmax.f32 %v491_v6, 0.0  ;;  %v474_v11 = vadd.f32 %v473_v8, %v425_v7  ;;  %vm569_vm15 = vcmp.lt.s32.totalorder %v553_v63, 256 }
  0xcd   : > { %v581_v13 = vsel %vm565_vm7, %v514_v10, 0.0  ;;  %v507_v14 = vmax.f32 %v474_v11, 0.0 }
  0xce   : > { %597 = vst [vmem:[%s1006_s4 + $0x58] sm:$0xff] %v581_v13  ;;  %v444_v15 = vpop.f32.mrf.mxu2 }
  0xcf   : > { %v574_v17 = vsel %vm558_vm8, %v507_v14, 0.0  ;;  %v445_v18 = vadd.f32 %v990_v1, %v444_v15  ;;  %v493_v19 = vpop.f32.mrf.mxu3 }
  0xd0   : > { %590 = vst [vmem:[%s1006_s4 + $0x20] sm:$0xff] %v574_v17  ;;  %v426_v20 = vpop.f32.mrf.mxu0 }
  0xd1   : > { %v494_v22 = vadd.f32 %v493_v19, %v445_v18  ;;  %v427_v23 = vadd.f32 %v990_v1, %v426_v20  ;;  %v475_v24 = vpop.f32.mrf.mxu1 }
  0xd3   : > { %v515_v26 = vmax.f32 %v494_v22, 0.0  ;;  %v476_v27 = vadd.f32 %v475_v24, %v427_v23 }
  0xd5   : > { %v582_v29 = vsel %vm566_vm9, %v515_v26, 0.0  ;;  %v508_v30 = vmax.f32 %v476_v27, 0.0 }
  0xd6   : > { %598 = vst [vmem:[%s1006_s4 + $0x60] sm:$0xff] %v582_v29  ;;  %v446_v31 = vpop.f32.mrf.mxu2 }
  0xd7   : > { %v575_v33 = vsel %vm559_vm10, %v508_v30, 0.0  ;;  %v447_v34 = vadd.f32 %v990_v1, %v446_v31  ;;  %v495_v35 = vpop.f32.mrf.mxu3 }
  0xd8   : > { %591 = vst [vmem:[%s1006_s4 + $0x28] sm:$0xff] %v575_v33  ;;  %v429_v36 = vpop.f32.mrf.mxu0 }
  0xd9   : > { %v496_v38 = vadd.f32 %v495_v35, %v447_v34  ;;  %v430_v39 = vadd.f32 %v990_v1, %v429_v36  ;;  %v478_v40 = vpop.f32.mrf.mxu1 }
  0xdb   : > { %v516_v42 = vmax.f32 %v496_v38, 0.0  ;;  %v479_v43 = vadd.f32 %v478_v40, %v430_v39 }
  0xdd   : > { %v583_v45 = vsel %vm567_vm11, %v516_v42, 0.0  ;;  %v509_v46 = vmax.f32 %v479_v43, 0.0 }
  0xde   : > { %599 = vst [vmem:[%s1006_s4 + $0x68] sm:$0xff] %v583_v45  ;;  %v449_v47 = vpop.f32.mrf.mxu2 }
  0xdf   : > { %v576_v49 = vsel %vm560_vm12, %v509_v46, 0.0  ;;  %v450_v50 = vadd.f32 %v990_v1, %v449_v47  ;;  %v498_v51 = vpop.f32.mrf.mxu3 }
  0xe0   : > { %592 = vst [vmem:[%s1006_s4 + $0x30] sm:$0xff] %v576_v49  ;;  %v431_v52 = vpop.f32.mrf.mxu0 }
  0xe1   : > { %v499_v54 = vadd.f32 %v498_v51, %v450_v50  ;;  %v432_v55 = vadd.f32 %v990_v1, %v431_v52  ;;  %v480_v56 = vpop.f32.mrf.mxu1 }
  0xe3   : > { %v517_v58 = vmax.f32 %v499_v54, 0.0  ;;  %v481_v59 = vadd.f32 %v480_v56, %v432_v55 }
  0xe5   : > { %v584_v60 = vsel %vm568_vm13, %v517_v58, 0.0  ;;  %v510_v61 = vmax.f32 %v481_v59, 0.0 }
  0xe6   : > { %600 = vst [vmem:[%s1006_s4 + $0x70] sm:$0xff] %v584_v60  ;;  %v451_v62 = vpop.f32.mrf.mxu2 }
  0xe7   : > { %v577_v0 = vsel %vm561_vm14, %v510_v61, 0.0  ;;  %v452_v4 = vadd.f32 %v990_v1, %v451_v62  ;;  %v500_v5 = vpop.f32.mrf.mxu3 }
  0xe8   : > { %593 = vst [vmem:[%s1006_s4 + $0x38] sm:$0xff] %v577_v0 }
  0xe9   : > { %v501_v6 = vadd.f32 %v500_v5, %v452_v4 }
  0xeb   : > { %v518_v7 = vmax.f32 %v501_v6, 0.0 }
  0xed   : > { %v585_v8 = vsel %vm569_vm15, %v518_v7, 0.0 }
  0xee   : > { %601 = vst [vmem:[%s1006_s4 + $0x78] sm:$0xff] %v585_v8 }
  0xef PF: > { %s13_s12 = sadd.s32 1, %s863_s12  }
  0xf0   : > { %p10_p4 = scmp.ge.s32.totalorder %s13_s12, 4  }
  0xf2   :  { %12 = sbr.rel (!%p10_p4) target bundleno = 1 (0x1), region = 62 }

// kernel: gnn_forward_pallas.13
= control target key start
LH: loop header
LB: loop body
LE: loop exit
PB: predicated region body
PF: predicated region fallthrough
CT: control target
= control target key end

     0   :  { %s909_s0 = inlined_call_operand.vmem [shape: f32[256,128], index: 0, kind: input, shape index: {}]   ;;  %s910_s1 = inlined_call_operand.vmem [shape: f32[1,128], index: 1, kind: input, shape index: {}]   ;;  %s911_s2 = inlined_call_operand.vmem [shape: f32[1,128], index: 2, kind: input, shape index: {}]   ;;  %s912_s3 = inlined_call_operand.vmem [shape: f32[256,128], index: 3, kind: output, shape index: {}]  }
   0x1   :  { %v384_v0 = vld [vmem:[%s909_s0] sm:$0xff]  ;;  %v389_v1 = vld [vmem:[%s909_s0 + $0x8] sm:$0xff]  ;;  %v394_v2 = vld [vmem:[%s909_s0 + $0x10] sm:$0xff] }
   0x2   :  { %v46_v3 = vadd.f32 %v389_v1, %v384_v0  ;;  %v87_v4 = vmul.f32 %v384_v0, %v384_v0  ;;  %v88_v5 = vmul.f32 %v389_v1, %v389_v1  ;;  %v405_v6 = vld [vmem:[%s909_s0 + $0x18] sm:$0xff]  ;;  %v89_v7 = vmul.f32 %v394_v2, %v394_v2  ;;  %v413_v9 = vld [vmem:[%s909_s0 + $0x20] sm:$0xff]  ;;  %v421_v13 = vld [vmem:[%s909_s0 + $0x28] sm:$0xff] }
   0x3   :  { %v90_v10 = vmul.f32 %v405_v6, %v405_v6  ;;  %v91_v14 = vmul.f32 %v413_v9, %v413_v9  ;;  %v429_v17 = vld [vmem:[%s909_s0 + $0x30] sm:$0xff]  ;;  %v92_v18 = vmul.f32 %v421_v13, %v421_v13  ;;  %v437_v21 = vld [vmem:[%s909_s0 + $0x38] sm:$0xff]  ;;  %v445_v25 = vld [vmem:[%s909_s0 + $0x40] sm:$0xff] }
   0x4   :  { %v47_v8 = vadd.f32 %v46_v3, %v394_v2  ;;  %v119_v11 = vadd.f32 %v88_v5, %v87_v4  ;;  %v93_v22 = vmul.f32 %v429_v17, %v429_v17  ;;  %v94_v26 = vmul.f32 %v437_v21, %v437_v21  ;;  %v453_v29 = vld [vmem:[%s909_s0 + $0x48] sm:$0xff]  ;;  %v461_v33 = vld [vmem:[%s909_s0 + $0x50] sm:$0xff]  ;;  %v469_v37 = vld [vmem:[%s909_s0 + $0x58] sm:$0xff] }
   0x5   :  { %v95_v30 = vmul.f32 %v445_v25, %v445_v25  ;;  %v96_v34 = vmul.f32 %v453_v29, %v453_v29  ;;  %v97_v38 = vmul.f32 %v461_v33, %v461_v33  ;;  %v477_v41 = vld [vmem:[%s909_s0 + $0x60] sm:$0xff]  ;;  %v98_v42 = vmul.f32 %v469_v37, %v469_v37  ;;  %v485_v45 = vld [vmem:[%s909_s0 + $0x68] sm:$0xff]  ;;  %v493_v49 = vld [vmem:[%s909_s0 + $0x70] sm:$0xff] }
   0x6   :  { %v48_v12 = vadd.f32 %v47_v8, %v405_v6  ;;  %v120_v15 = vadd.f32 %v119_v11, %v89_v7  ;;  %v99_v46 = vmul.f32 %v477_v41, %v477_v41  ;;  %v100_v50 = vmul.f32 %v485_v45, %v485_v45  ;;  %v501_v53 = vld [vmem:[%s909_s0 + $0x78] sm:$0xff]  ;;  %v509_v57 = vld [vmem:[%s909_s0 + $0x80] sm:$0xff]  ;;  %v517_v61 = vld [vmem:[%s909_s0 + $0x88] sm:$0xff] }
   0x7   :  { %v101_v54 = vmul.f32 %v493_v49, %v493_v49  ;;  %v102_v58 = vmul.f32 %v501_v53, %v501_v53  ;;  %v103_v62 = vmul.f32 %v509_v57, %v509_v57  ;;  %v525_v4 = vld [vmem:[%s909_s0 + $0x90] sm:$0xff]  ;;  %v104_v5 = vmul.f32 %v517_v61, %v517_v61 }
   0x8   :  { %v49_v16 = vadd.f32 %v48_v12, %v413_v9  ;;  %v121_v19 = vadd.f32 %v120_v15, %v90_v10  ;;  %v533_v10 = vld [vmem:[%s909_s0 + $0x98] sm:$0xff]  ;;  %v105_v11 = vmul.f32 %v525_v4, %v525_v4  ;;  %v541_v15 = vld [vmem:[%s909_s0 + $0xa0] sm:$0xff] }
   0xa   :  { %v50_v20 = vadd.f32 %v49_v16, %v421_v13  ;;  %v122_v23 = vadd.f32 %v121_v19, %v91_v14  ;;  %v106_v16 = vmul.f32 %v533_v10, %v533_v10 }
   0xc   :  { %v51_v24 = vadd.f32 %v50_v20, %v429_v17  ;;  %v123_v27 = vadd.f32 %v122_v23, %v92_v18  ;;  %v549_v20 = vld [vmem:[%s909_s0 + $0xa8] sm:$0xff] }
   0xe   :  { %v52_v28 = vadd.f32 %v51_v24, %v437_v21  ;;  %v124_v31 = vadd.f32 %v123_v27, %v93_v22  ;;  %v107_v22 = vmul.f32 %v541_v15, %v541_v15  ;;  %v108_v27 = vmul.f32 %v549_v20, %v549_v20 }
  0x10   :  { %v53_v32 = vadd.f32 %v52_v28, %v445_v25  ;;  %v125_v35 = vadd.f32 %v124_v31, %v94_v26  ;;  %v557_v26 = vld [vmem:[%s909_s0 + $0xb0] sm:$0xff]  ;;  %v565_v31 = vld [vmem:[%s909_s0 + $0xb8] sm:$0xff] }
  0x12   :  { %v54_v36 = vadd.f32 %v53_v32, %v453_v29  ;;  %v126_v39 = vadd.f32 %v125_v35, %v95_v30  ;;  %v109_v32 = vmul.f32 %v557_v26, %v557_v26 }
  0x14   :  { %v55_v40 = vadd.f32 %v54_v36, %v461_v33  ;;  %v127_v43 = vadd.f32 %v126_v39, %v96_v34  ;;  %v573_v36 = vld [vmem:[%s909_s0 + $0xc0] sm:$0xff] }
  0x16   :  { %v56_v44 = vadd.f32 %v55_v40, %v469_v37  ;;  %v128_v47 = vadd.f32 %v127_v43, %v97_v38  ;;  %v110_v38 = vmul.f32 %v565_v31, %v565_v31  ;;  %v111_v43 = vmul.f32 %v573_v36, %v573_v36 }
  0x18   :  { %v57_v48 = vadd.f32 %v56_v44, %v477_v41  ;;  %v129_v51 = vadd.f32 %v128_v47, %v98_v42  ;;  %v581_v42 = vld [vmem:[%s909_s0 + $0xc8] sm:$0xff]  ;;  %v589_v47 = vld [vmem:[%s909_s0 + $0xd0] sm:$0xff] }
  0x1a   :  { %v58_v52 = vadd.f32 %v57_v48, %v485_v45  ;;  %v130_v55 = vadd.f32 %v129_v51, %v99_v46  ;;  %v112_v48 = vmul.f32 %v581_v42, %v581_v42 }
  0x1c   :  { %v59_v56 = vadd.f32 %v58_v52, %v493_v49  ;;  %v131_v59 = vadd.f32 %v130_v55, %v100_v50  ;;  %v597_v52 = vld [vmem:[%s909_s0 + $0xd8] sm:$0xff] }
  0x1e   :  { %v60_v60 = vadd.f32 %v59_v56, %v501_v53  ;;  %v132_v63 = vadd.f32 %v131_v59, %v101_v54  ;;  %v113_v54 = vmul.f32 %v589_v47, %v589_v47  ;;  %v114_v59 = vmul.f32 %v597_v52, %v597_v52 }
  0x20   :  { %v61_v3 = vadd.f32 %v60_v60, %v509_v57  ;;  %v133_v7 = vadd.f32 %v132_v63, %v102_v58  ;;  %v605_v58 = vld [vmem:[%s909_s0 + $0xe0] sm:$0xff]  ;;  %v613_v63 = vld [vmem:[%s909_s0 + $0xe8] sm:$0xff] }
  0x22   :  { %v62_v8 = vadd.f32 %v61_v3, %v517_v61  ;;  %v134_v12 = vadd.f32 %v133_v7, %v103_v62  ;;  %v115_v3 = vmul.f32 %v605_v58, %v605_v58 }
  0x24   :  { %v63_v14 = vadd.f32 %v62_v8, %v525_v4  ;;  %v135_v18 = vadd.f32 %v134_v12, %v104_v5  ;;  %v621_v8 = vld [vmem:[%s909_s0 + $0xf0] sm:$0xff] }
  0x26   :  { %v64_v19 = vadd.f32 %v63_v14, %v533_v10  ;;  %v136_v23 = vadd.f32 %v135_v18, %v105_v11  ;;  %v116_v11 = vmul.f32 %v613_v63, %v613_v63 }
  0x28   :  { %v65_v24 = vadd.f32 %v64_v19, %v541_v15  ;;  %v137_v28 = vadd.f32 %v136_v23, %v106_v16  ;;  %v629_v16 = vld [vmem:[%s909_s0 + $0xf8] sm:$0xff] }
  0x2a   :  { %v66_v30 = vadd.f32 %v65_v24, %v549_v20  ;;  %v138_v34 = vadd.f32 %v137_v28, %v107_v22  ;;  %v117_v22 = vmul.f32 %v621_v8, %v621_v8 }
  0x2c   :  { %v67_v35 = vadd.f32 %v66_v30, %v557_v26  ;;  %v139_v39 = vadd.f32 %v138_v34, %v108_v27  ;;  %v118_v27 = vmul.f32 %v629_v16, %v629_v16 }
  0x2e   :  { %v68_v40 = vadd.f32 %v67_v35, %v565_v31  ;;  %v140_v44 = vadd.f32 %v139_v39, %v109_v32 }
  0x30   :  { %v69_v46 = vadd.f32 %v68_v40, %v573_v36  ;;  %v141_v50 = vadd.f32 %v140_v44, %v110_v38 }
  0x32   :  { %v70_v51 = vadd.f32 %v69_v46, %v581_v42  ;;  %v142_v55 = vadd.f32 %v141_v50, %v111_v43 }
  0x34   :  { %v71_v56 = vadd.f32 %v70_v51, %v589_v47  ;;  %v143_v60 = vadd.f32 %v142_v55, %v112_v48 }
  0x36   :  { %v72_v62 = vadd.f32 %v71_v56, %v597_v52  ;;  %v144_v5 = vadd.f32 %v143_v60, %v113_v54 }
  0x38   :  { %v73_v7 = vadd.f32 %v72_v62, %v605_v58  ;;  %v145_v12 = vadd.f32 %v144_v5, %v114_v59 }
  0x3a   :  { %v74_v14 = vadd.f32 %v73_v7, %v613_v63  ;;  %v146_v18 = vadd.f32 %v145_v12, %v115_v3 }
  0x3c   :  { %v75_v19 = vadd.f32 %v74_v14, %v621_v8  ;;  %v147_v23 = vadd.f32 %v146_v18, %v116_v11 }
  0x3e   :  { %v76_v24 = vadd.f32 %v75_v19, %v629_v16  ;;  %v148_v28 = vadd.f32 %v147_v23, %v117_v22 }
  0x40   :  { %77 = vadd.xlane.f32.xlu0 %v76_v24  ;;  %v149_v30 = vadd.f32 %v148_v28, %v118_v27 }
  0x48   :  { %150 = vadd.xlane.f32.xlu0 %v149_v30 }
  0xb3   :  { %v78_v32 = vpop.xlane.xlu0 %77 }
  0xb4   :  { %v79_v34 = vrot.slane %v78_v32, 4 }
  0xb6   :  { %v80_v35 = vadd.f32 %v79_v34, %v78_v32 }
  0xb8   :  { %v81_v38 = vrot.slane %v80_v35, 2 }
  0xba   :  { %v82_v39 = vadd.f32 %v81_v38, %v80_v35 }
  0xbb   :  { %v151_v40 = vpop.xlane.xlu0 %150 }
  0xbc   :  { %v152_v43 = vrot.slane %v151_v40, 4  ;;  %v83_v44 = vrot.slane %v82_v39, 1 }
  0xbe   :  { %v153_v46 = vadd.f32 %v152_v43, %v151_v40  ;;  %v84_v48 = vadd.f32 %v83_v44, %v82_v39 }
  0xc0   :  { %v154_v50 = vrot.slane %v153_v46, 2  ;;  %351 = vpush %v84_v48 }
  0xc2   :  { %v155_v51 = vadd.f32 %v154_v50, %v153_v46 }
  0xc4   :  { %v156_v54 = vrot.slane %v155_v51, 1 }
  0xc6   :  { %v157_v55 = vadd.f32 %v156_v54, %v155_v51 }
  0xc8   :  { %353 = vpush %v157_v55 }
  0xf1   :  { %s352_s0 = spop %351 }
  0xf2   :  { %v86_v56 = vstv %s352_s0 }
  0xf3   :  { %v637_v59 = vmul.f32 0.00390625, %v86_v56 }
  0xf5   :  { %v162_v3 = vmul.f32 %v637_v59, %v637_v59  ;;  %v179_v34 = vsub.f32 %v384_v0, %v637_v59  ;;  %v180_v35 = vsub.f32 %v389_v1, %v637_v59  ;;  %v181_v38 = vsub.f32 %v394_v2, %v637_v59  ;;  %v659_v0 = vld [vmem:[%s910_s1] ss:$0 sm:$0xff] }
  0xf6   :  { %v182_v39 = vsub.f32 %v405_v6, %v637_v59  ;;  %v183_v40 = vsub.f32 %v413_v9, %v637_v59  ;;  %v184_v1 = vsub.f32 %v421_v13, %v637_v59  ;;  %v185_v6 = vsub.f32 %v429_v17, %v637_v59  ;;  %v679_v17 = vld [vmem:[%s911_s2] ss:$0 sm:$0xff] }
  0xf7   :  { %v186_v48 = vsub.f32 %v437_v21, %v637_v59  ;;  %v187_v50 = vsub.f32 %v445_v25, %v637_v59  ;;  %v188_v21 = vsub.f32 %v453_v29, %v637_v59  ;;  %v189_v25 = vsub.f32 %v461_v33, %v637_v59 }
  0xf9   :  { %s354_s22 = spop %353 }
  0xfa   :  { %v159_v60 = vstv %s354_s22 }
  0xfb   :  { %v161_v62 = vmul.f32 0.00390625, %v159_v60 }
  0xfd   :  { %v163_v5 = vsub.f32 %v161_v62, %v162_v3  ;;  %v190_v3 = vsub.f32 %v469_v37, %v637_v59 }
  0xff   :  { %v164_v7 = vmax.f32 %v163_v5, 0.0 }
 0x101   :  { %357 = vrsqrt.f32 %v164_v7  ;;  %vm172_vm0 = vcmp.eq.f32.partialorder %v164_v7, inf  ;;  %v175_v27 = vand.u32 2147483648, %v164_v7  ;;  %vm174_vm1 = vcmp.eq.f32.partialorder %v164_v7, 0.0 }
 0x107   :  { %v358_v11 = vpop.eup %357 }
 0x108   :  { %v166_v12 = vmul.f32 %v358_v11, %v164_v7 }
 0x10a   :  { %v167_v14 = vmul.f32 %v358_v11, %v166_v12 }
 0x10c   :  { %v168_v18 = vmul.f32 0.5, %v167_v14 }
 0x10e   :  { %v169_v19 = vsub.f32 1.5, %v168_v18 }
 0x110   :  { %v170_v22 = vmul.f32 %v358_v11, %v169_v19  ;;  %v191_v11 = vsub.f32 %v477_v41, %v637_v59 }
 0x112   :  { %v171_v23 = vmul.f32 %v170_v22, %v164_v7  ;;  %v192_v22 = vsub.f32 %v485_v45, %v637_v59  ;;  %v194_v45 = vsub.f32 %v501_v53, %v637_v59  ;;  %v196_v53 = vsub.f32 %v517_v61, %v637_v59 }
 0x113   :  { %v198_v61 = vsub.f32 %v533_v10, %v637_v59  ;;  %v200_v10 = vsub.f32 %v549_v20, %v637_v59  ;;  %v202_v20 = vsub.f32 %v565_v31, %v637_v59  ;;  %v204_v31 = vsub.f32 %v581_v42, %v637_v59 }
 0x114   :  { %v173_v24 = vsel %vm172_vm0, %v164_v7, %v171_v23  ;;  %v206_v42 = vsub.f32 %v597_v52, %v637_v59  ;;  %v208_v52 = vsub.f32 %v613_v63, %v637_v59  ;;  %v210_v63 = vsub.f32 %v629_v16, %v637_v59 }
 0x115   :  { %v176_v28 = vsel %vm174_vm1, %v175_v27, %v173_v24  ;;  %v193_v27 = vsub.f32 %v493_v49, %v637_v59  ;;  %v195_v49 = vsub.f32 %v509_v57, %v637_v59  ;;  %v197_v57 = vsub.f32 %v525_v4, %v637_v59 }
 0x116   :  { %v177_v30 = vadd.f32 1e-05, %v176_v28  ;;  %v199_v4 = vsub.f32 %v541_v15, %v637_v59  ;;  %v201_v15 = vsub.f32 %v557_v26, %v637_v59  ;;  %v203_v26 = vsub.f32 %v573_v36, %v637_v59 }
 0x117   :  { %v205_v36 = vsub.f32 %v589_v47, %v637_v59  ;;  %v207_v47 = vsub.f32 %v605_v58, %v637_v59  ;;  %v209_v58 = vsub.f32 %v621_v8, %v637_v59 }
 0x118   :  { %359 = vrcp.f32 %v177_v30 }
 0x11e   :  { %v641_v32 = vpop.eup %359 }
 0x11f   :  { %v211_v43 = vmul.f32 %v641_v32, %v179_v34  ;;  %v212_v44 = vmul.f32 %v641_v32, %v180_v35  ;;  %v213_v46 = vmul.f32 %v641_v32, %v181_v38  ;;  %v214_v2 = vmul.f32 %v641_v32, %v182_v39 }
 0x120   :  { %v215_v9 = vmul.f32 %v641_v32, %v183_v40  ;;  %v216_v51 = vmul.f32 %v641_v32, %v184_v1  ;;  %v217_v54 = vmul.f32 %v641_v32, %v185_v6  ;;  %v218_v60 = vmul.f32 %v641_v32, %v186_v48 }
 0x121   :  { %v247_v55 = vmul.f32 %v659_v0, %v211_v43  ;;  %v248_v13 = vmul.f32 %v659_v0, %v212_v44  ;;  %v249_v56 = vmul.f32 %v659_v0, %v213_v46  ;;  %v250_v62 = vmul.f32 %v659_v0, %v214_v2 }
 0x122   :  { %v219_v5 = vmul.f32 %v641_v32, %v187_v50  ;;  %v251_v7 = vmul.f32 %v659_v0, %v215_v9  ;;  %v220_v12 = vmul.f32 %v641_v32, %v188_v21  ;;  %v221_v29 = vmul.f32 %v641_v32, %v189_v25 }
 0x123   :  { %v252_v33 = vmul.f32 %v659_v0, %v216_v51  ;;  %v253_v14 = vmul.f32 %v659_v0, %v217_v54  ;;  %v283_v18 = vadd.f32 %v679_v17, %v247_v55  ;;  %v284_v19 = vadd.f32 %v679_v17, %v248_v13 }
 0x124   :  { %v285_v37 = vadd.f32 %v679_v17, %v249_v56  ;;  %v222_v23 = vmul.f32 %v641_v32, %v190_v3  ;;  %v254_v41 = vmul.f32 %v659_v0, %v218_v60  ;;  %v286_v24 = vadd.f32 %v679_v17, %v250_v62 }
 0x125   :  { %v223_v28 = vmul.f32 %v641_v32, %v191_v11  ;;  %v255_v30 = vmul.f32 %v659_v0, %v219_v5  ;;  %v287_v34 = vadd.f32 %v679_v17, %v251_v7  ;;  %315 = vst [vmem:[%s912_s3] sm:$0xff] %v283_v18  ;;  %v224_v35 = vmul.f32 %v641_v32, %v192_v22 }
 0x126   :  { %v256_v38 = vmul.f32 %v659_v0, %v220_v12  ;;  %v288_v39 = vadd.f32 %v679_v17, %v252_v33  ;;  %316 = vst [vmem:[%s912_s3 + $0x8] sm:$0xff] %v284_v19  ;;  %v225_v40 = vmul.f32 %v641_v32, %v193_v27  ;;  %v257_v43 = vmul.f32 %v659_v0, %v221_v29 }
 0x127   :  { %v289_v44 = vadd.f32 %v679_v17, %v253_v14  ;;  %317 = vst [vmem:[%s912_s3 + $0x10] sm:$0xff] %v285_v37  ;;  %v226_v46 = vmul.f32 %v641_v32, %v194_v45  ;;  %v258_v1 = vmul.f32 %v659_v0, %v222_v23  ;;  %v290_v2 = vadd.f32 %v679_v17, %v254_v41 }
 0x128   :  { %318 = vst [vmem:[%s912_s3 + $0x18] sm:$0xff] %v286_v24  ;;  %v227_v6 = vmul.f32 %v641_v32, %v195_v49  ;;  %v259_v9 = vmul.f32 %v659_v0, %v223_v28  ;;  %v291_v48 = vadd.f32 %v679_v17, %v255_v30  ;;  %v228_v50 = vmul.f32 %v641_v32, %v196_v53 }
 0x129   :  { %319 = vst [vmem:[%s912_s3 + $0x20] sm:$0xff] %v287_v34  ;;  %v260_v51 = vmul.f32 %v659_v0, %v224_v35  ;;  %v292_v54 = vadd.f32 %v679_v17, %v256_v38  ;;  %v229_v55 = vmul.f32 %v641_v32, %v197_v57  ;;  %v261_v13 = vmul.f32 %v659_v0, %v225_v40 }
 0x12a   :  { %320 = vst [vmem:[%s912_s3 + $0x28] sm:$0xff] %v288_v39  ;;  %v293_v56 = vadd.f32 %v679_v17, %v257_v43  ;;  %v230_v21 = vmul.f32 %v641_v32, %v198_v61  ;;  %v262_v25 = vmul.f32 %v659_v0, %v226_v46  ;;  %v294_v60 = vadd.f32 %v679_v17, %v258_v1 }
 0x12b   :  { %321 = vst [vmem:[%s912_s3 + $0x30] sm:$0xff] %v289_v44  ;;  %v231_v62 = vmul.f32 %v641_v32, %v199_v4  ;;  %v263_v3 = vmul.f32 %v659_v0, %v227_v6  ;;  %v295_v5 = vadd.f32 %v679_v17, %v259_v9  ;;  %v232_v7 = vmul.f32 %v641_v32, %v200_v10 }
 0x12c   :  { %322 = vst [vmem:[%s912_s3 + $0x38] sm:$0xff] %v290_v2  ;;  %v264_v11 = vmul.f32 %v659_v0, %v228_v50  ;;  %v296_v12 = vadd.f32 %v679_v17, %v260_v51  ;;  %v233_v29 = vmul.f32 %v641_v32, %v201_v15  ;;  %v265_v33 = vmul.f32 %v659_v0, %v229_v55 }
 0x12d   :  { %323 = vst [vmem:[%s912_s3 + $0x40] sm:$0xff] %v291_v48  ;;  %v297_v14 = vadd.f32 %v679_v17, %v261_v13  ;;  %v234_v18 = vmul.f32 %v641_v32, %v202_v20  ;;  %v266_v19 = vmul.f32 %v659_v0, %v230_v21  ;;  %v298_v37 = vadd.f32 %v679_v17, %v262_v25 }
 0x12e   :  { %324 = vst [vmem:[%s912_s3 + $0x48] sm:$0xff] %v292_v54  ;;  %v235_v22 = vmul.f32 %v641_v32, %v203_v26  ;;  %v267_v23 = vmul.f32 %v659_v0, %v231_v62  ;;  %v299_v41 = vadd.f32 %v679_v17, %v263_v3  ;;  %v236_v24 = vmul.f32 %v641_v32, %v204_v31 }
 0x12f   :  { %325 = vst [vmem:[%s912_s3 + $0x50] sm:$0xff] %v293_v56  ;;  %v268_v27 = vmul.f32 %v659_v0, %v232_v7  ;;  %v300_v28 = vadd.f32 %v679_v17, %v264_v11  ;;  %v237_v30 = vmul.f32 %v641_v32, %v205_v36  ;;  %v269_v34 = vmul.f32 %v659_v0, %v233_v29 }
 0x130   :  { %326 = vst [vmem:[%s912_s3 + $0x58] sm:$0xff] %v294_v60  ;;  %v301_v45 = vadd.f32 %v679_v17, %v265_v33  ;;  %v238_v35 = vmul.f32 %v641_v32, %v206_v42  ;;  %v270_v38 = vmul.f32 %v659_v0, %v234_v18  ;;  %v302_v39 = vadd.f32 %v679_v17, %v266_v19 }
 0x131   :  { %327 = vst [vmem:[%s912_s3 + $0x60] sm:$0xff] %v295_v5  ;;  %v239_v49 = vmul.f32 %v641_v32, %v207_v47  ;;  %v271_v40 = vmul.f32 %v659_v0, %v235_v22  ;;  %v303_v43 = vadd.f32 %v679_v17, %v267_v23  ;;  %v240_v44 = vmul.f32 %v641_v32, %v208_v52 }
 0x132   :  { %328 = vst [vmem:[%s912_s3 + $0x68] sm:$0xff] %v296_v12  ;;  %v272_v53 = vmul.f32 %v659_v0, %v236_v24  ;;  %v304_v46 = vadd.f32 %v679_v17, %v268_v27  ;;  %v241_v8 = vmul.f32 %v641_v32, %v209_v58  ;;  %v273_v1 = vmul.f32 %v659_v0, %v237_v30 }
 0x133   :  { %329 = vst [vmem:[%s912_s3 + $0x70] sm:$0xff] %v297_v14  ;;  %v305_v2 = vadd.f32 %v679_v17, %v269_v34  ;;  %v242_v16 = vmul.f32 %v641_v32, %v210_v63  ;;  %v274_v59 = vmul.f32 %v659_v0, %v238_v35  ;;  %v306_v57 = vadd.f32 %v679_v17, %v270_v38 }
 0x134   :  { %330 = vst [vmem:[%s912_s3 + $0x78] sm:$0xff] %v298_v37  ;;  %v275_v6 = vmul.f32 %v659_v0, %v239_v49  ;;  %v307_v9 = vadd.f32 %v679_v17, %v271_v40  ;;  %v276_v48 = vmul.f32 %v659_v0, %v240_v44  ;;  %v308_v32 = vadd.f32 %v679_v17, %v272_v53 }
 0x135   :  { %331 = vst [vmem:[%s912_s3 + $0x80] sm:$0xff] %v299_v41  ;;  %v277_v61 = vmul.f32 %v659_v0, %v241_v8  ;;  %v309_v50 = vadd.f32 %v679_v17, %v273_v1  ;;  %v278_v51 = vmul.f32 %v659_v0, %v242_v16  ;;  %v310_v54 = vadd.f32 %v679_v17, %v274_v59 }
 0x136   :  { %332 = vst [vmem:[%s912_s3 + $0x88] sm:$0xff] %v300_v28  ;;  %v311_v4 = vadd.f32 %v679_v17, %v275_v6  ;;  %v312_v55 = vadd.f32 %v679_v17, %v276_v48 }
 0x137   :  { %333 = vst [vmem:[%s912_s3 + $0x90] sm:$0xff] %v301_v45  ;;  %v313_v0 = vadd.f32 %v679_v17, %v277_v61  ;;  %v314_v13 = vadd.f32 %v679_v17, %v278_v51 }
 0x138   :  { %334 = vst [vmem:[%s912_s3 + $0x98] sm:$0xff] %v302_v39 }
 0x139   :  { %335 = vst [vmem:[%s912_s3 + $0xa0] sm:$0xff] %v303_v43 }
 0x13a   :  { %336 = vst [vmem:[%s912_s3 + $0xa8] sm:$0xff] %v304_v46 }
 0x13b   :  { %337 = vst [vmem:[%s912_s3 + $0xb0] sm:$0xff] %v305_v2 }
 0x13c   :  { %338 = vst [vmem:[%s912_s3 + $0xb8] sm:$0xff] %v306_v57 }
 0x13d   :  { %339 = vst [vmem:[%s912_s3 + $0xc0] sm:$0xff] %v307_v9 }
 0x13e   :  { %340 = vst [vmem:[%s912_s3 + $0xc8] sm:$0xff] %v308_v32 }
 0x13f   :  { %341 = vst [vmem:[%s912_s3 + $0xd0] sm:$0xff] %v309_v50 }
 0x140   :  { %342 = vst [vmem:[%s912_s3 + $0xd8] sm:$0xff] %v310_v54 }
 0x141   :  { %343 = vst [vmem:[%s912_s3 + $0xe0] sm:$0xff] %v311_v4 }
 0x142   :  { %344 = vst [vmem:[%s912_s3 + $0xe8] sm:$0xff] %v312_v55 }
 0x143   :  { %345 = vst [vmem:[%s912_s3 + $0xf0] sm:$0xff] %v313_v0 }
 0x144   :  { %346 = vst [vmem:[%s912_s3 + $0xf8] sm:$0xff] %v314_v13 }

</bundles_post_ra>
